<compile_context>
chip_gen: v7x
topology: tpu7x:2x2x1
jax: 0.10.0
libtpu: 0.0.40
codegen_flags: <defaults>
</compile_context>

<pallas_src>
import jax
import jax.numpy as jnp
import numpy as np
from jax.experimental import pallas as pl
from jax.experimental.pallas import tpu as pltpu

NEG_SLOPE = 0.2


def _lrelu(x):
    return jnp.where(x > 0, x, NEG_SLOPE * x)


# ----------------------------------------------------------------------------
# Node-tile selection (bounds VMEM; exercised with a tiny budget in the test)
# ----------------------------------------------------------------------------
def _choose_node_tile(node, node_sizes, tree_feats, in_f, degree, support,
                      out_f, weight_bytes, budget):
    reps = [node // n for n in node_sizes[:-1]]

    def valid(tn):
        if node % tn:
            return False
        # sublane-dim alignment of the tiled blocks (parent level, W_branch, out)
        if tn != node and tn % 8 != 0:
            return False
        # each tile must lie on every ancestor's repetition boundary
        return all(tn % r == 0 or r % tn == 0 for r in reps)

    def footprint(tn):
        d = degree * in_f
        wb_tile = 2 * in_f * tn * d * weight_bytes            # double-buffered
        x_tile = 2 * tn * in_f * 4
        h_acc = tn * d * 4                                     # upsample accumulator
        child = tn * in_f * support * 4 + tn * out_f * 4
        out_t = 2 * tn * degree * out_f * 4
        fixed = (sum(f * out_f for f in tree_feats)
                 + in_f * in_f * support + in_f * support * out_f) * weight_bytes
        anc = 2 * sum(n * f * 4 for n, f in zip(node_sizes[:-1], tree_feats[:-1]))
        return wb_tile + x_tile + h_acc + child + out_t + fixed + anc

    divisors = sorted((d for d in range(1, node + 1) if node % d == 0),
                      reverse=True)
    for tn in divisors:                       # biggest tile that fits the budget
        if valid(tn) and footprint(tn) <= budget:
            return tn
    for tn in reversed(divisors):             # fallback: smallest valid tile
        if valid(tn):
            return tn
    return node


# ----------------------------------------------------------------------------
# Pallas kernel for one TreeGCN layer
# ----------------------------------------------------------------------------
def _make_treegcn_kernel(n_tree, node_sizes, degree, tile_nodes, activation,
                         compute_dtype):
    """Ref order: tree_0..tree_{n-2} (full, un-repeated ancestor levels),
    tree_{n-1} (node-tiled parent level), w_root_0..w_root_{n-1},
    w_branch_T (in_f-major, node-tiled), w_loop1, w_loop2, bias, out."""
    node = node_sizes[-1]
    tn = tile_nodes

    def kernel(*refs):
        anc_refs = refs[:n_tree - 1]
        x_ref = refs[n_tree - 1]
        wroot_refs = refs[n_tree:2 * n_tree]
        wbt_ref, w1_ref, w2_ref, bias_ref, out_ref = refs[2 * n_tree:]

        t = pl.program_id(0)                       # node-tile index
        in_f = x_ref.shape[-1]
        out_f = w2_ref.shape[-1]

        x = x_ref[0]                               # (tn, in_f) f32 parent rows

        # ---- root: parent level directly on this tile ...
        root = jnp.dot(x.astype(compute_dtype), wroot_refs[-1][...],
                       preferred_element_type=jnp.float32)
        # ... ancestors at their un-repeated granularity: matmul first, then
        # replicate the small (rows, out_f) result (select-based repeat keeps
        # everything inside definitely-supported Mosaic ops).
        for i in range(n_tree - 1):
            rep = node // node_sizes[i]            # tile rows per ancestor row
            wr = wroot_refs[i][...]
            if rep >= tn:                          # whole tile in one ancestor row
                a = (t * tn) // rep
                rows = anc_refs[i][0, pl.ds(a, 1), :]
                ri = jnp.dot(rows.astype(compute_dtype), wr,
                             preferred_element_type=jnp.float32)      # (1, out_f)
                root = root + jnp.broadcast_to(ri, (tn, out_f))
            else:
                rpt = tn // rep                    # ancestor rows in this tile
                base = pl.multiple_of(t * rpt, rpt)
                rows = anc_refs[i][0, pl.ds(base, rpt), :]
                ri = jnp.dot(rows.astype(compute_dtype), wr,
                             preferred_element_type=jnp.float32)      # (rpt, out_f)
                grp = jax.lax.broadcasted_iota(jnp.int32, (tn, 1), 0) // rep
                for a in range(rpt):               # row-repeat via iota/select
                    root = root + jnp.where(grp == a, ri[a:a + 1, :], 0.0)

        # ---- branch: block-diagonal upsample h[n] = x[n] @ W_branch[n] as a
        # lane-broadcast FMA sweep over in_f (VPU), no big 3-D intermediate.
        h = x[:, 0:1] * wbt_ref[0]                 # (tn, degree*in_f) f32
        for i in range(1, in_f):
            h = h + x[:, i:i + 1] * wbt_ref[i]
        h = _lrelu(h)

        if activation:
            b_all = bias_ref[...]                  # (degree, out_f) f32

        # ---- per-child W_loop + combine; children lane-packed in the output
        # block (one lane-dense slab per tile; wrapper reshape is free).
        for c in range(degree):
            hc = h[:, c * in_f:(c + 1) * in_f]                         # (tn, in_f)
            hc = jnp.dot(hc.astype(compute_dtype), w1_ref[...],
                         preferred_element_type=jnp.float32)           # (tn, in_f*sup)
            hc = jnp.dot(hc.astype(compute_dtype), w2_ref[...],
                         preferred_element_type=jnp.float32)           # (tn, out_f)
            oc = hc + root
            if activation:
                oc = _lrelu(oc + b_all[c:c + 1, :])
            out_ref[0, :, c * out_f:(c + 1) * out_f] = oc.astype(out_ref.dtype)

    return kernel


def treegcn_layer(tree, p, *, compute_dtype=jnp.bfloat16, node_tile=None,
                  vmem_budget_bytes=24 * 1024 * 1024):
    """Apply one TreeGCN layer. `tree` is the list of all previous levels."""
    B = tree[0].shape[0]
    node = tree[-1].shape[1]
    in_f = tree[-1].shape[2]
    degree = p["degree"]
    activation = p["activation"]

    # weights cast to the matmul dtype (halves W_branch DMA traffic for bf16);
    # W_branch is presented in_f-major so the kernel never reshapes/transposes.
    w_root = [w.astype(compute_dtype) for w in p["w_root"]]
    out_f = w_root[0].shape[1]
    w1 = p["w1"].astype(compute_dtype)
    w2 = p["w2"].astype(compute_dtype)
    wbt = jnp.transpose(p["w_branch"], (1, 0, 2)).astype(compute_dtype)
    bias = p["bias"].astype(jnp.float32)

    node_sizes = tuple(t.shape[1] for t in tree)
    tree_feats = tuple(t.shape[2] for t in tree)
    support = p["w1"].shape[1] // in_f

    tn = node_tile if node_tile is not None else _choose_node_tile(
        node, node_sizes, tree_feats, in_f, degree, support, out_f,
        jnp.dtype(compute_dtype).itemsize, vmem_budget_bytes)
    assert node % tn == 0
    num_tiles = node // tn
    n_tree = len(tree)

    kernel = _make_treegcn_kernel(n_tree, node_sizes, degree, tn, activation,
                                  compute_dtype)

    in_specs = (
        # un-repeated ancestor levels (tiny): full block per batch element
        [pl.BlockSpec((1, t.shape[1], t.shape[2]), lambda nt, b: (b, 0, 0))
         for t in tree[:-1]]
        # parent level: node-tiled so only the rows this tile needs are DMA'd
        + [pl.BlockSpec((1, tn, in_f), lambda nt, b: (b, nt, 0))]
        + [pl.BlockSpec(w.shape, lambda nt, b: (0, 0)) for w in w_root]
        + [pl.BlockSpec((in_f, tn, degree * in_f), lambda nt, b: (0, nt, 0)),
           pl.BlockSpec(w1.shape, lambda nt, b: (0, 0)),
           pl.BlockSpec(w2.shape, lambda nt, b: (0, 0)),
           pl.BlockSpec(bias.shape, lambda nt, b: (0, 0))]
    )

    # batch is the fastest grid axis -> the W_branch tile (dominant HBM traffic)
    # keeps the same block index across consecutive steps and is fetched once
    # per node tile instead of once per (tile, batch) pair.
    packed = pl.pallas_call(
        kernel,
        out_shape=jax.ShapeDtypeStruct((B, node, degree * out_f), jnp.float32),
        grid=(num_tiles, B),
        in_specs=in_specs,
        out_specs=pl.BlockSpec((1, tn, degree * out_f), lambda nt, b: (b, nt, 0)),
        compiler_params=pltpu.CompilerParams(
            dimension_semantics=("parallel", "parallel"),
            vmem_limit_bytes=48 * 1024 * 1024),
    )(*tree, *w_root, wbt, w1, w2, bias)

    # child-major lane packing -> point layout; row-major identity reshape.
    return packed.reshape(B, node * degree, out_f)


# ----------------------------------------------------------------------------
# Model: parameter init + forward (sequence of TreeGCN layers)
# ----------------------------------------------------------------------------
def init_params(key, features, degrees, support):
    layer_num = len(features) - 1
    assert layer_num == len(degrees)
    params = []
    node = 1
    for d in range(layer_num):
        in_f, out_f = features[d], features[d + 1]
        deg = degrees[d]
        ks = jax.random.split(jax.random.fold_in(key, d), d + 5)
        w_root = [0.1 * jax.random.normal(ks[i], (features[i], out_f), jnp.float32)
                  for i in range(d + 1)]
        w_branch = 0.1 * jax.random.normal(ks[d + 1], (node, in_f, deg * in_f),
                                           jnp.float32)
        w1 = 0.1 * jax.random.normal(ks[d + 2], (in_f, in_f * support), jnp.float32)
        w2 = 0.1 * jax.random.normal(ks[d + 3], (in_f * support, out_f), jnp.float32)
        bias = 0.1 * jax.random.normal(ks[d + 4], (deg, out_f), jnp.float32)
        params.append(dict(w_root=w_root, w_branch=w_branch, w1=w1, w2=w2,
                           bias=bias, node=node, degree=deg,
                           activation=(d != layer_num - 1)))
        node *= deg
    return params


def tree_gen_forward(z, params, *, compute_dtype=jnp.bfloat16,
                     vmem_budget_bytes=24 * 1024 * 1024):
    tree = [z]
    for p in params:
        tree.append(treegcn_layer(tree, p, compute_dtype=compute_dtype,
                                  vmem_budget_bytes=vmem_budget_bytes))
    # TODO(synk): torch_geometric Batch.from_data_list has no Pallas equivalent;
    # we return the dense pointcloud (B, num_points, features[-1]) instead.
    return tree[-1]


# ----------------------------------------------------------------------------
# Pure-JAX reference (torch-faithful, same dtype-quantization policy)
# ----------------------------------------------------------------------------
def _treegcn_ref(tree, p, compute_dtype):
    B = tree[0].shape[0]
    node, deg = p["node"], p["degree"]
    in_f = tree[-1].shape[2]
    hi = jax.lax.Precision.HIGHEST
    q = lambda a: a.astype(compute_dtype).astype(jnp.float32)

    root = 0.0
    for i, wr in enumerate(p["w_root"]):
        rn = jnp.einsum("bnf,fo->bno", q(tree[i]), q(wr), precision=hi)
        root = root + jnp.repeat(rn, node // tree[i].shape[1], axis=1)

    branch = jnp.einsum("bni,nio->bno", tree[-1], q(p["w_branch"]), precision=hi)
    branch = _lrelu(branch)
    branch = branch.reshape(B, node * deg, in_f)
    branch = jnp.einsum("bnf,fo->bno", q(branch), q(p["w1"]), precision=hi)
    branch = jnp.einsum("bnf,fo->bno", q(branch), q(p["w2"]), precision=hi)

    out = jnp.repeat(root, deg, axis=1) + branch
    if p["activation"]:
        out = _lrelu(out + jnp.tile(p["bias"], (node, 1))[None])
    return out


def tree_gen_ref(z, params, *, compute_dtype=jnp.float32):
    tree = [z]
    for p in params:
        tree.append(_treegcn_ref(tree, p, compute_dtype))
    return tree[-1]


# ----------------------------------------------------------------------------
if __name__ == "__main__":
    key = jax.random.PRNGKey(0)
    batch = 2

    # ---- config 1: toy config (single node tile per layer), f32 and bf16 ----
    features = [32, 16, 8]
    degrees = [4, 4]
    support = 4
    kz, kp = jax.random.split(key)
    z = jax.random.normal(kz, (batch, 1, features[0]), jnp.float32)
    params = init_params(kp, features, degrees, support)

    pc32 = jax.block_until_ready(
        tree_gen_forward(z, params, compute_dtype=jnp.float32))
    ref32 = jax.block_until_ready(
        tree_gen_ref(z, params, compute_dtype=jnp.float32))
    assert pc32.shape == (batch, int(np.prod(degrees)), features[-1]), pc32.shape
    # default-precision MXU rounds f32 operands; reference uses HIGHEST, so the
    # f32 check uses a correspondingly relaxed (but still tight) tolerance.
    np.testing.assert_allclose(np.asarray(pc32), np.asarray(ref32),
                               rtol=1e-2, atol=1e-2)

    pc16 = jax.block_until_ready(
        tree_gen_forward(z, params, compute_dtype=jnp.bfloat16))
    ref16 = jax.block_until_ready(
        tree_gen_ref(z, params, compute_dtype=jnp.bfloat16))
    np.testing.assert_allclose(np.asarray(pc16), np.asarray(ref16),
                               rtol=2e-2, atol=2e-2)

    # ---- config 2: deeper config, tiny VMEM budget to force multi-tile grid --
    features2 = [32, 16, 16, 8]
    degrees2 = [4, 4, 4]
    support2 = 2
    kz2, kp2 = jax.random.split(jax.random.fold_in(key, 1))
    z2 = jax.random.normal(kz2, (batch, 1, features2[0]), jnp.float32)
    params2 = init_params(kp2, features2, degrees2, support2)
    pc2 = jax.block_until_ready(
        tree_gen_forward(z2, params2, compute_dtype=jnp.bfloat16,
                         vmem_budget_bytes=1))      # forces >1 node tile/layer
    ref2 = jax.block_until_ready(
        tree_gen_ref(z2, params2, compute_dtype=jnp.bfloat16))
    assert pc2.shape == (batch, int(np.prod(degrees2)), features2[-1]), pc2.shape
    np.testing.assert_allclose(np.asarray(pc2), np.asarray(ref2),
                               rtol=2e-2, atol=2e-2)

    print("KERNEL_OK")
</pallas_src>

<mosaic_0001>
module attributes {stable_mosaic.version = 11 : i64} {
  func.func @kernel(%arg0: i32, %arg1: i32, %arg2: memref<1x1x32xf32, #tpu.memory_space<vmem>>, %arg3: memref<32x16xf32, #tpu.memory_space<vmem>>, %arg4: memref<32x1x128xf32, #tpu.memory_space<vmem>>, %arg5: memref<32x128xf32, #tpu.memory_space<vmem>>, %arg6: memref<128x16xf32, #tpu.memory_space<vmem>>, %arg7: memref<4x16xf32, #tpu.memory_space<vmem>>, %arg8: memref<1x1x64xf32, #tpu.memory_space<vmem>>) attributes {dimension_semantics = [#tpu.dimension_semantics<parallel>, #tpu.dimension_semantics<parallel>], iteration_bounds = array<i64: 1, 2>, scalar_prefetch = 0 : i64, scratch_operands = 0 : i64, tpu.core_type = #tpu.core_type<tc>, window_params = [{transform_indices = @transform_0, window_bounds = array<i64: 1, 1, 32>}, {pipeline_mode = #tpu.pipeline_mode<synchronous>, transform_indices = @transform_1, window_bounds = array<i64: 32, 16>}, {transform_indices = @transform_2, window_bounds = array<i64: 32, 1, 128>}, {pipeline_mode = #tpu.pipeline_mode<synchronous>, transform_indices = @transform_3, window_bounds = array<i64: 32, 128>}, {pipeline_mode = #tpu.pipeline_mode<synchronous>, transform_indices = @transform_4, window_bounds = array<i64: 128, 16>}, {pipeline_mode = #tpu.pipeline_mode<synchronous>, transform_indices = @transform_5, window_bounds = array<i64: 4, 16>}, {transform_indices = @transform_6, window_bounds = array<i64: 1, 1, 64>}]} {
    %c0 = arith.constant 0 : index
    %c0_0 = arith.constant 0 : index
    %c0_1 = arith.constant 0 : index
    %0 = vector.load %arg2[%c0, %c0_0, %c0_1] : memref<1x1x32xf32, #tpu.memory_space<vmem>>, vector<1x1x32xf32>
    %1 = vector.shape_cast %0 : vector<1x1x32xf32> to vector<1x32xf32>
    %c0_2 = arith.constant 0 : index
    %c0_3 = arith.constant 0 : index
    %2 = vector.load %arg3[%c0_2, %c0_3] : memref<32x16xf32, #tpu.memory_space<vmem>>, vector<32x16xf32>
    %cst = arith.constant dense<0.000000e+00> : vector<1x16xf32>
    %3 = tpu.matmul %1, %2, %cst {dimension_numbers = #tpu.dot_dimension_numbers<[1], [0], [0], [1], [0, 0, 1, 1], [], []>} : vector<1x32xf32>, vector<32x16xf32>, vector<1x16xf32> -> vector<1x16xf32>
    %4 = vector.extract_strided_slice %1 {offsets = [0, 0], sizes = [1, 1], strides = [1, 1]} : vector<1x32xf32> to vector<1x1xf32>
    %c0_4 = arith.constant 0 : index
    %c0_5 = arith.constant 0 : index
    %c0_6 = arith.constant 0 : index
    %5 = vector.load %arg4[%c0_4, %c0_5, %c0_6] : memref<32x1x128xf32, #tpu.memory_space<vmem>>, vector<1x1x128xf32>
    %6 = vector.shape_cast %5 : vector<1x1x128xf32> to vector<1x128xf32>
    %7 = vector.broadcast %4 : vector<1x1xf32> to vector<1x128xf32>
    %8 = arith.mulf %7, %6 : vector<1x128xf32>
    %9 = vector.extract_strided_slice %1 {offsets = [0, 1], sizes = [1, 1], strides = [1, 1]} : vector<1x32xf32> to vector<1x1xf32>
    %c1 = arith.constant 1 : index
    %c0_7 = arith.constant 0 : index
    %c0_8 = arith.constant 0 : index
    %10 = vector.load %arg4[%c1, %c0_7, %c0_8] : memref<32x1x128xf32, #tpu.memory_space<vmem>>, vector<1x1x128xf32>
    %11 = vector.shape_cast %10 : vector<1x1x128xf32> to vector<1x128xf32>
    %12 = vector.broadcast %9 : vector<1x1xf32> to vector<1x128xf32>
    %13 = arith.mulf %12, %11 : vector<1x128xf32>
    %14 = arith.addf %8, %13 : vector<1x128xf32>
    %15 = vector.extract_strided_slice %1 {offsets = [0, 2], sizes = [1, 1], strides = [1, 1]} : vector<1x32xf32> to vector<1x1xf32>
    %c2 = arith.constant 2 : index
    %c0_9 = arith.constant 0 : index
    %c0_10 = arith.constant 0 : index
    %16 = vector.load %arg4[%c2, %c0_9, %c0_10] : memref<32x1x128xf32, #tpu.memory_space<vmem>>, vector<1x1x128xf32>
    %17 = vector.shape_cast %16 : vector<1x1x128xf32> to vector<1x128xf32>
    %18 = vector.broadcast %15 : vector<1x1xf32> to vector<1x128xf32>
    %19 = arith.mulf %18, %17 : vector<1x128xf32>
    %20 = arith.addf %14, %19 : vector<1x128xf32>
    %21 = vector.extract_strided_slice %1 {offsets = [0, 3], sizes = [1, 1], strides = [1, 1]} : vector<1x32xf32> to vector<1x1xf32>
    %c3 = arith.constant 3 : index
    %c0_11 = arith.constant 0 : index
    %c0_12 = arith.constant 0 : index
    %22 = vector.load %arg4[%c3, %c0_11, %c0_12] : memref<32x1x128xf32, #tpu.memory_space<vmem>>, vector<1x1x128xf32>
    %23 = vector.shape_cast %22 : vector<1x1x128xf32> to vector<1x128xf32>
    %24 = vector.broadcast %21 : vector<1x1xf32> to vector<1x128xf32>
    %25 = arith.mulf %24, %23 : vector<1x128xf32>
    %26 = arith.addf %20, %25 : vector<1x128xf32>
    %27 = vector.extract_strided_slice %1 {offsets = [0, 4], sizes = [1, 1], strides = [1, 1]} : vector<1x32xf32> to vector<1x1xf32>
    %c4 = arith.constant 4 : index
    %c0_13 = arith.constant 0 : index
    %c0_14 = arith.constant 0 : index
    %28 = vector.load %arg4[%c4, %c0_13, %c0_14] : memref<32x1x128xf32, #tpu.memory_space<vmem>>, vector<1x1x128xf32>
    %29 = vector.shape_cast %28 : vector<1x1x128xf32> to vector<1x128xf32>
    %30 = vector.broadcast %27 : vector<1x1xf32> to vector<1x128xf32>
    %31 = arith.mulf %30, %29 : vector<1x128xf32>
    %32 = arith.addf %26, %31 : vector<1x128xf32>
    %33 = vector.extract_strided_slice %1 {offsets = [0, 5], sizes = [1, 1], strides = [1, 1]} : vector<1x32xf32> to vector<1x1xf32>
    %c5 = arith.constant 5 : index
    %c0_15 = arith.constant 0 : index
    %c0_16 = arith.constant 0 : index
    %34 = vector.load %arg4[%c5, %c0_15, %c0_16] : memref<32x1x128xf32, #tpu.memory_space<vmem>>, vector<1x1x128xf32>
    %35 = vector.shape_cast %34 : vector<1x1x128xf32> to vector<1x128xf32>
    %36 = vector.broadcast %33 : vector<1x1xf32> to vector<1x128xf32>
    %37 = arith.mulf %36, %35 : vector<1x128xf32>
    %38 = arith.addf %32, %37 : vector<1x128xf32>
    %39 = vector.extract_strided_slice %1 {offsets = [0, 6], sizes = [1, 1], strides = [1, 1]} : vector<1x32xf32> to vector<1x1xf32>
    %c6 = arith.constant 6 : index
    %c0_17 = arith.constant 0 : index
    %c0_18 = arith.constant 0 : index
    %40 = vector.load %arg4[%c6, %c0_17, %c0_18] : memref<32x1x128xf32, #tpu.memory_space<vmem>>, vector<1x1x128xf32>
    %41 = vector.shape_cast %40 : vector<1x1x128xf32> to vector<1x128xf32>
    %42 = vector.broadcast %39 : vector<1x1xf32> to vector<1x128xf32>
    %43 = arith.mulf %42, %41 : vector<1x128xf32>
    %44 = arith.addf %38, %43 : vector<1x128xf32>
    %45 = vector.extract_strided_slice %1 {offsets = [0, 7], sizes = [1, 1], strides = [1, 1]} : vector<1x32xf32> to vector<1x1xf32>
    %c7 = arith.constant 7 : index
    %c0_19 = arith.constant 0 : index
    %c0_20 = arith.constant 0 : index
    %46 = vector.load %arg4[%c7, %c0_19, %c0_20] : memref<32x1x128xf32, #tpu.memory_space<vmem>>, vector<1x1x128xf32>
    %47 = vector.shape_cast %46 : vector<1x1x128xf32> to vector<1x128xf32>
    %48 = vector.broadcast %45 : vector<1x1xf32> to vector<1x128xf32>
    %49 = arith.mulf %48, %47 : vector<1x128xf32>
    %50 = arith.addf %44, %49 : vector<1x128xf32>
    %51 = vector.extract_strided_slice %1 {offsets = [0, 8], sizes = [1, 1], strides = [1, 1]} : vector<1x32xf32> to vector<1x1xf32>
    %c8 = arith.constant 8 : index
    %c0_21 = arith.constant 0 : index
    %c0_22 = arith.constant 0 : index
    %52 = vector.load %arg4[%c8, %c0_21, %c0_22] : memref<32x1x128xf32, #tpu.memory_space<vmem>>, vector<1x1x128xf32>
    %53 = vector.shape_cast %52 : vector<1x1x128xf32> to vector<1x128xf32>
    %54 = vector.broadcast %51 : vector<1x1xf32> to vector<1x128xf32>
    %55 = arith.mulf %54, %53 : vector<1x128xf32>
    %56 = arith.addf %50, %55 : vector<1x128xf32>
    %57 = vector.extract_strided_slice %1 {offsets = [0, 9], sizes = [1, 1], strides = [1, 1]} : vector<1x32xf32> to vector<1x1xf32>
    %c9 = arith.constant 9 : index
    %c0_23 = arith.constant 0 : index
    %c0_24 = arith.constant 0 : index
    %58 = vector.load %arg4[%c9, %c0_23, %c0_24] : memref<32x1x128xf32, #tpu.memory_space<vmem>>, vector<1x1x128xf32>
    %59 = vector.shape_cast %58 : vector<1x1x128xf32> to vector<1x128xf32>
    %60 = vector.broadcast %57 : vector<1x1xf32> to vector<1x128xf32>
    %61 = arith.mulf %60, %59 : vector<1x128xf32>
    %62 = arith.addf %56, %61 : vector<1x128xf32>
    %63 = vector.extract_strided_slice %1 {offsets = [0, 10], sizes = [1, 1], strides = [1, 1]} : vector<1x32xf32> to vector<1x1xf32>
    %c10 = arith.constant 10 : index
    %c0_25 = arith.constant 0 : index
    %c0_26 = arith.constant 0 : index
    %64 = vector.load %arg4[%c10, %c0_25, %c0_26] : memref<32x1x128xf32, #tpu.memory_space<vmem>>, vector<1x1x128xf32>
    %65 = vector.shape_cast %64 : vector<1x1x128xf32> to vector<1x128xf32>
    %66 = vector.broadcast %63 : vector<1x1xf32> to vector<1x128xf32>
    %67 = arith.mulf %66, %65 : vector<1x128xf32>
    %68 = arith.addf %62, %67 : vector<1x128xf32>
    %69 = vector.extract_strided_slice %1 {offsets = [0, 11], sizes = [1, 1], strides = [1, 1]} : vector<1x32xf32> to vector<1x1xf32>
    %c11 = arith.constant 11 : index
    %c0_27 = arith.constant 0 : index
    %c0_28 = arith.constant 0 : index
    %70 = vector.load %arg4[%c11, %c0_27, %c0_28] : memref<32x1x128xf32, #tpu.memory_space<vmem>>, vector<1x1x128xf32>
    %71 = vector.shape_cast %70 : vector<1x1x128xf32> to vector<1x128xf32>
    %72 = vector.broadcast %69 : vector<1x1xf32> to vector<1x128xf32>
    %73 = arith.mulf %72, %71 : vector<1x128xf32>
    %74 = arith.addf %68, %73 : vector<1x128xf32>
    %75 = vector.extract_strided_slice %1 {offsets = [0, 12], sizes = [1, 1], strides = [1, 1]} : vector<1x32xf32> to vector<1x1xf32>
    %c12 = arith.constant 12 : index
    %c0_29 = arith.constant 0 : index
    %c0_30 = arith.constant 0 : index
    %76 = vector.load %arg4[%c12, %c0_29, %c0_30] : memref<32x1x128xf32, #tpu.memory_space<vmem>>, vector<1x1x128xf32>
    %77 = vector.shape_cast %76 : vector<1x1x128xf32> to vector<1x128xf32>
    %78 = vector.broadcast %75 : vector<1x1xf32> to vector<1x128xf32>
    %79 = arith.mulf %78, %77 : vector<1x128xf32>
    %80 = arith.addf %74, %79 : vector<1x128xf32>
    %81 = vector.extract_strided_slice %1 {offsets = [0, 13], sizes = [1, 1], strides = [1, 1]} : vector<1x32xf32> to vector<1x1xf32>
    %c13 = arith.constant 13 : index
    %c0_31 = arith.constant 0 : index
    %c0_32 = arith.constant 0 : index
    %82 = vector.load %arg4[%c13, %c0_31, %c0_32] : memref<32x1x128xf32, #tpu.memory_space<vmem>>, vector<1x1x128xf32>
    %83 = vector.shape_cast %82 : vector<1x1x128xf32> to vector<1x128xf32>
    %84 = vector.broadcast %81 : vector<1x1xf32> to vector<1x128xf32>
    %85 = arith.mulf %84, %83 : vector<1x128xf32>
    %86 = arith.addf %80, %85 : vector<1x128xf32>
    %87 = vector.extract_strided_slice %1 {offsets = [0, 14], sizes = [1, 1], strides = [1, 1]} : vector<1x32xf32> to vector<1x1xf32>
    %c14 = arith.constant 14 : index
    %c0_33 = arith.constant 0 : index
    %c0_34 = arith.constant 0 : index
    %88 = vector.load %arg4[%c14, %c0_33, %c0_34] : memref<32x1x128xf32, #tpu.memory_space<vmem>>, vector<1x1x128xf32>
    %89 = vector.shape_cast %88 : vector<1x1x128xf32> to vector<1x128xf32>
    %90 = vector.broadcast %87 : vector<1x1xf32> to vector<1x128xf32>
    %91 = arith.mulf %90, %89 : vector<1x128xf32>
    %92 = arith.addf %86, %91 : vector<1x128xf32>
    %93 = vector.extract_strided_slice %1 {offsets = [0, 15], sizes = [1, 1], strides = [1, 1]} : vector<1x32xf32> to vector<1x1xf32>
    %c15 = arith.constant 15 : index
    %c0_35 = arith.constant 0 : index
    %c0_36 = arith.constant 0 : index
    %94 = vector.load %arg4[%c15, %c0_35, %c0_36] : memref<32x1x128xf32, #tpu.memory_space<vmem>>, vector<1x1x128xf32>
    %95 = vector.shape_cast %94 : vector<1x1x128xf32> to vector<1x128xf32>
    %96 = vector.broadcast %93 : vector<1x1xf32> to vector<1x128xf32>
    %97 = arith.mulf %96, %95 : vector<1x128xf32>
    %98 = arith.addf %92, %97 : vector<1x128xf32>
    %99 = vector.extract_strided_slice %1 {offsets = [0, 16], sizes = [1, 1], strides = [1, 1]} : vector<1x32xf32> to vector<1x1xf32>
    %c16 = arith.constant 16 : index
    %c0_37 = arith.constant 0 : index
    %c0_38 = arith.constant 0 : index
    %100 = vector.load %arg4[%c16, %c0_37, %c0_38] : memref<32x1x128xf32, #tpu.memory_space<vmem>>, vector<1x1x128xf32>
    %101 = vector.shape_cast %100 : vector<1x1x128xf32> to vector<1x128xf32>
    %102 = vector.broadcast %99 : vector<1x1xf32> to vector<1x128xf32>
    %103 = arith.mulf %102, %101 : vector<1x128xf32>
    %104 = arith.addf %98, %103 : vector<1x128xf32>
    %105 = vector.extract_strided_slice %1 {offsets = [0, 17], sizes = [1, 1], strides = [1, 1]} : vector<1x32xf32> to vector<1x1xf32>
    %c17 = arith.constant 17 : index
    %c0_39 = arith.constant 0 : index
    %c0_40 = arith.constant 0 : index
    %106 = vector.load %arg4[%c17, %c0_39, %c0_40] : memref<32x1x128xf32, #tpu.memory_space<vmem>>, vector<1x1x128xf32>
    %107 = vector.shape_cast %106 : vector<1x1x128xf32> to vector<1x128xf32>
    %108 = vector.broadcast %105 : vector<1x1xf32> to vector<1x128xf32>
    %109 = arith.mulf %108, %107 : vector<1x128xf32>
    %110 = arith.addf %104, %109 : vector<1x128xf32>
    %111 = vector.extract_strided_slice %1 {offsets = [0, 18], sizes = [1, 1], strides = [1, 1]} : vector<1x32xf32> to vector<1x1xf32>
    %c18 = arith.constant 18 : index
    %c0_41 = arith.constant 0 : index
    %c0_42 = arith.constant 0 : index
    %112 = vector.load %arg4[%c18, %c0_41, %c0_42] : memref<32x1x128xf32, #tpu.memory_space<vmem>>, vector<1x1x128xf32>
    %113 = vector.shape_cast %112 : vector<1x1x128xf32> to vector<1x128xf32>
    %114 = vector.broadcast %111 : vector<1x1xf32> to vector<1x128xf32>
    %115 = arith.mulf %114, %113 : vector<1x128xf32>
    %116 = arith.addf %110, %115 : vector<1x128xf32>
    %117 = vector.extract_strided_slice %1 {offsets = [0, 19], sizes = [1, 1], strides = [1, 1]} : vector<1x32xf32> to vector<1x1xf32>
    %c19 = arith.constant 19 : index
    %c0_43 = arith.constant 0 : index
    %c0_44 = arith.constant 0 : index
    %118 = vector.load %arg4[%c19, %c0_43, %c0_44] : memref<32x1x128xf32, #tpu.memory_space<vmem>>, vector<1x1x128xf32>
    %119 = vector.shape_cast %118 : vector<1x1x128xf32> to vector<1x128xf32>
    %120 = vector.broadcast %117 : vector<1x1xf32> to vector<1x128xf32>
    %121 = arith.mulf %120, %119 : vector<1x128xf32>
    %122 = arith.addf %116, %121 : vector<1x128xf32>
    %123 = vector.extract_strided_slice %1 {offsets = [0, 20], sizes = [1, 1], strides = [1, 1]} : vector<1x32xf32> to vector<1x1xf32>
    %c20 = arith.constant 20 : index
    %c0_45 = arith.constant 0 : index
    %c0_46 = arith.constant 0 : index
    %124 = vector.load %arg4[%c20, %c0_45, %c0_46] : memref<32x1x128xf32, #tpu.memory_space<vmem>>, vector<1x1x128xf32>
    %125 = vector.shape_cast %124 : vector<1x1x128xf32> to vector<1x128xf32>
    %126 = vector.broadcast %123 : vector<1x1xf32> to vector<1x128xf32>
    %127 = arith.mulf %126, %125 : vector<1x128xf32>
    %128 = arith.addf %122, %127 : vector<1x128xf32>
    %129 = vector.extract_strided_slice %1 {offsets = [0, 21], sizes = [1, 1], strides = [1, 1]} : vector<1x32xf32> to vector<1x1xf32>
    %c21 = arith.constant 21 : index
    %c0_47 = arith.constant 0 : index
    %c0_48 = arith.constant 0 : index
    %130 = vector.load %arg4[%c21, %c0_47, %c0_48] : memref<32x1x128xf32, #tpu.memory_space<vmem>>, vector<1x1x128xf32>
    %131 = vector.shape_cast %130 : vector<1x1x128xf32> to vector<1x128xf32>
    %132 = vector.broadcast %129 : vector<1x1xf32> to vector<1x128xf32>
    %133 = arith.mulf %132, %131 : vector<1x128xf32>
    %134 = arith.addf %128, %133 : vector<1x128xf32>
    %135 = vector.extract_strided_slice %1 {offsets = [0, 22], sizes = [1, 1], strides = [1, 1]} : vector<1x32xf32> to vector<1x1xf32>
    %c22 = arith.constant 22 : index
    %c0_49 = arith.constant 0 : index
    %c0_50 = arith.constant 0 : index
    %136 = vector.load %arg4[%c22, %c0_49, %c0_50] : memref<32x1x128xf32, #tpu.memory_space<vmem>>, vector<1x1x128xf32>
    %137 = vector.shape_cast %136 : vector<1x1x128xf32> to vector<1x128xf32>
    %138 = vector.broadcast %135 : vector<1x1xf32> to vector<1x128xf32>
    %139 = arith.mulf %138, %137 : vector<1x128xf32>
    %140 = arith.addf %134, %139 : vector<1x128xf32>
    %141 = vector.extract_strided_slice %1 {offsets = [0, 23], sizes = [1, 1], strides = [1, 1]} : vector<1x32xf32> to vector<1x1xf32>
    %c23 = arith.constant 23 : index
    %c0_51 = arith.constant 0 : index
    %c0_52 = arith.constant 0 : index
    %142 = vector.load %arg4[%c23, %c0_51, %c0_52] : memref<32x1x128xf32, #tpu.memory_space<vmem>>, vector<1x1x128xf32>
    %143 = vector.shape_cast %142 : vector<1x1x128xf32> to vector<1x128xf32>
    %144 = vector.broadcast %141 : vector<1x1xf32> to vector<1x128xf32>
    %145 = arith.mulf %144, %143 : vector<1x128xf32>
    %146 = arith.addf %140, %145 : vector<1x128xf32>
    %147 = vector.extract_strided_slice %1 {offsets = [0, 24], sizes = [1, 1], strides = [1, 1]} : vector<1x32xf32> to vector<1x1xf32>
    %c24 = arith.constant 24 : index
    %c0_53 = arith.constant 0 : index
    %c0_54 = arith.constant 0 : index
    %148 = vector.load %arg4[%c24, %c0_53, %c0_54] : memref<32x1x128xf32, #tpu.memory_space<vmem>>, vector<1x1x128xf32>
    %149 = vector.shape_cast %148 : vector<1x1x128xf32> to vector<1x128xf32>
    %150 = vector.broadcast %147 : vector<1x1xf32> to vector<1x128xf32>
    %151 = arith.mulf %150, %149 : vector<1x128xf32>
    %152 = arith.addf %146, %151 : vector<1x128xf32>
    %153 = vector.extract_strided_slice %1 {offsets = [0, 25], sizes = [1, 1], strides = [1, 1]} : vector<1x32xf32> to vector<1x1xf32>
    %c25 = arith.constant 25 : index
    %c0_55 = arith.constant 0 : index
    %c0_56 = arith.constant 0 : index
    %154 = vector.load %arg4[%c25, %c0_55, %c0_56] : memref<32x1x128xf32, #tpu.memory_space<vmem>>, vector<1x1x128xf32>
    %155 = vector.shape_cast %154 : vector<1x1x128xf32> to vector<1x128xf32>
    %156 = vector.broadcast %153 : vector<1x1xf32> to vector<1x128xf32>
    %157 = arith.mulf %156, %155 : vector<1x128xf32>
    %158 = arith.addf %152, %157 : vector<1x128xf32>
    %159 = vector.extract_strided_slice %1 {offsets = [0, 26], sizes = [1, 1], strides = [1, 1]} : vector<1x32xf32> to vector<1x1xf32>
    %c26 = arith.constant 26 : index
    %c0_57 = arith.constant 0 : index
    %c0_58 = arith.constant 0 : index
    %160 = vector.load %arg4[%c26, %c0_57, %c0_58] : memref<32x1x128xf32, #tpu.memory_space<vmem>>, vector<1x1x128xf32>
    %161 = vector.shape_cast %160 : vector<1x1x128xf32> to vector<1x128xf32>
    %162 = vector.broadcast %159 : vector<1x1xf32> to vector<1x128xf32>
    %163 = arith.mulf %162, %161 : vector<1x128xf32>
    %164 = arith.addf %158, %163 : vector<1x128xf32>
    %165 = vector.extract_strided_slice %1 {offsets = [0, 27], sizes = [1, 1], strides = [1, 1]} : vector<1x32xf32> to vector<1x1xf32>
    %c27 = arith.constant 27 : index
    %c0_59 = arith.constant 0 : index
    %c0_60 = arith.constant 0 : index
    %166 = vector.load %arg4[%c27, %c0_59, %c0_60] : memref<32x1x128xf32, #tpu.memory_space<vmem>>, vector<1x1x128xf32>
    %167 = vector.shape_cast %166 : vector<1x1x128xf32> to vector<1x128xf32>
    %168 = vector.broadcast %165 : vector<1x1xf32> to vector<1x128xf32>
    %169 = arith.mulf %168, %167 : vector<1x128xf32>
    %170 = arith.addf %164, %169 : vector<1x128xf32>
    %171 = vector.extract_strided_slice %1 {offsets = [0, 28], sizes = [1, 1], strides = [1, 1]} : vector<1x32xf32> to vector<1x1xf32>
    %c28 = arith.constant 28 : index
    %c0_61 = arith.constant 0 : index
    %c0_62 = arith.constant 0 : index
    %172 = vector.load %arg4[%c28, %c0_61, %c0_62] : memref<32x1x128xf32, #tpu.memory_space<vmem>>, vector<1x1x128xf32>
    %173 = vector.shape_cast %172 : vector<1x1x128xf32> to vector<1x128xf32>
    %174 = vector.broadcast %171 : vector<1x1xf32> to vector<1x128xf32>
    %175 = arith.mulf %174, %173 : vector<1x128xf32>
    %176 = arith.addf %170, %175 : vector<1x128xf32>
    %177 = vector.extract_strided_slice %1 {offsets = [0, 29], sizes = [1, 1], strides = [1, 1]} : vector<1x32xf32> to vector<1x1xf32>
    %c29 = arith.constant 29 : index
    %c0_63 = arith.constant 0 : index
    %c0_64 = arith.constant 0 : index
    %178 = vector.load %arg4[%c29, %c0_63, %c0_64] : memref<32x1x128xf32, #tpu.memory_space<vmem>>, vector<1x1x128xf32>
    %179 = vector.shape_cast %178 : vector<1x1x128xf32> to vector<1x128xf32>
    %180 = vector.broadcast %177 : vector<1x1xf32> to vector<1x128xf32>
    %181 = arith.mulf %180, %179 : vector<1x128xf32>
    %182 = arith.addf %176, %181 : vector<1x128xf32>
    %183 = vector.extract_strided_slice %1 {offsets = [0, 30], sizes = [1, 1], strides = [1, 1]} : vector<1x32xf32> to vector<1x1xf32>
    %c30 = arith.constant 30 : index
    %c0_65 = arith.constant 0 : index
    %c0_66 = arith.constant 0 : index
    %184 = vector.load %arg4[%c30, %c0_65, %c0_66] : memref<32x1x128xf32, #tpu.memory_space<vmem>>, vector<1x1x128xf32>
    %185 = vector.shape_cast %184 : vector<1x1x128xf32> to vector<1x128xf32>
    %186 = vector.broadcast %183 : vector<1x1xf32> to vector<1x128xf32>
    %187 = arith.mulf %186, %185 : vector<1x128xf32>
    %188 = arith.addf %182, %187 : vector<1x128xf32>
    %189 = vector.extract_strided_slice %1 {offsets = [0, 31], sizes = [1, 1], strides = [1, 1]} : vector<1x32xf32> to vector<1x1xf32>
    %c31 = arith.constant 31 : index
    %c0_67 = arith.constant 0 : index
    %c0_68 = arith.constant 0 : index
    %190 = vector.load %arg4[%c31, %c0_67, %c0_68] : memref<32x1x128xf32, #tpu.memory_space<vmem>>, vector<1x1x128xf32>
    %191 = vector.shape_cast %190 : vector<1x1x128xf32> to vector<1x128xf32>
    %192 = vector.broadcast %189 : vector<1x1xf32> to vector<1x128xf32>
    %193 = arith.mulf %192, %191 : vector<1x128xf32>
    %194 = arith.addf %188, %193 : vector<1x128xf32>
    %cst_69 = arith.constant 0.000000e+00 : f32
    %195 = vector.broadcast %cst_69 : f32 to vector<1x128xf32>
    %196 = arith.cmpf ogt, %194, %195 : vector<1x128xf32>
    %cst_70 = arith.constant 2.000000e-01 : f32
    %197 = vector.broadcast %cst_70 : f32 to vector<1x128xf32>
    %198 = arith.mulf %197, %194 : vector<1x128xf32>
    %199 = arith.select %196, %194, %198 : vector<1x128xi1>, vector<1x128xf32>
    %c0_71 = arith.constant 0 : index
    %c0_72 = arith.constant 0 : index
    %200 = vector.load %arg7[%c0_71, %c0_72] : memref<4x16xf32, #tpu.memory_space<vmem>>, vector<4x16xf32>
    %201 = vector.extract_strided_slice %199 {offsets = [0, 0], sizes = [1, 32], strides = [1, 1]} : vector<1x128xf32> to vector<1x32xf32>
    %c0_73 = arith.constant 0 : index
    %c0_74 = arith.constant 0 : index
    %202 = vector.load %arg5[%c0_73, %c0_74] : memref<32x128xf32, #tpu.memory_space<vmem>>, vector<32x128xf32>
    %cst_75 = arith.constant dense<0.000000e+00> : vector<1x128xf32>
    %203 = tpu.matmul %201, %202, %cst_75 {dimension_numbers = #tpu.dot_dimension_numbers<[1], [0], [0], [1], [0, 0, 1, 1], [], []>} : vector<1x32xf32>, vector<32x128xf32>, vector<1x128xf32> -> vector<1x128xf32>
    %c0_76 = arith.constant 0 : index
    %c0_77 = arith.constant 0 : index
    %204 = vector.load %arg6[%c0_76, %c0_77] : memref<128x16xf32, #tpu.memory_space<vmem>>, vector<128x16xf32>
    %cst_78 = arith.constant dense<0.000000e+00> : vector<1x16xf32>
    %205 = tpu.matmul %203, %204, %cst_78 {dimension_numbers = #tpu.dot_dimension_numbers<[1], [0], [0], [1], [0, 0, 1, 1], [], []>} : vector<1x128xf32>, vector<128x16xf32>, vector<1x16xf32> -> vector<1x16xf32>
    %206 = arith.addf %205, %3 : vector<1x16xf32>
    %207 = vector.extract_strided_slice %200 {offsets = [0, 0], sizes = [1, 16], strides = [1, 1]} : vector<4x16xf32> to vector<1x16xf32>
    %208 = arith.addf %206, %207 : vector<1x16xf32>
    %cst_79 = arith.constant 0.000000e+00 : f32
    %209 = vector.broadcast %cst_79 : f32 to vector<1x16xf32>
    %210 = arith.cmpf ogt, %208, %209 : vector<1x16xf32>
    %cst_80 = arith.constant 2.000000e-01 : f32
    %211 = vector.broadcast %cst_80 : f32 to vector<1x16xf32>
    %212 = arith.mulf %211, %208 : vector<1x16xf32>
    %213 = arith.select %210, %208, %212 : vector<1x16xi1>, vector<1x16xf32>
    %c0_81 = arith.constant 0 : index
    %c0_82 = arith.constant 0 : index
    %c0_83 = arith.constant 0 : index
    %214 = vector.load %arg8[%c0_81, %c0_82, %c0_83] : memref<1x1x64xf32, #tpu.memory_space<vmem>>, vector<1x1x16xf32>
    %215 = vector.shape_cast %214 : vector<1x1x16xf32> to vector<1x16xf32>
    %216 = vector.shape_cast %213 : vector<1x16xf32> to vector<1x1x16xf32>
    tpu.vector_store %arg8[%c0_81, %c0_82, %c0_83], %216 {strides = array<i32>} : memref<1x1x64xf32, #tpu.memory_space<vmem>>, vector<1x1x16xf32>,
    %217 = vector.extract_strided_slice %199 {offsets = [0, 32], sizes = [1, 32], strides = [1, 1]} : vector<1x128xf32> to vector<1x32xf32>
    %c0_84 = arith.constant 0 : index
    %c0_85 = arith.constant 0 : index
    %218 = vector.load %arg5[%c0_84, %c0_85] : memref<32x128xf32, #tpu.memory_space<vmem>>, vector<32x128xf32>
    %cst_86 = arith.constant dense<0.000000e+00> : vector<1x128xf32>
    %219 = tpu.matmul %217, %218, %cst_86 {dimension_numbers = #tpu.dot_dimension_numbers<[1], [0], [0], [1], [0, 0, 1, 1], [], []>} : vector<1x32xf32>, vector<32x128xf32>, vector<1x128xf32> -> vector<1x128xf32>
    %c0_87 = arith.constant 0 : index
    %c0_88 = arith.constant 0 : index
    %220 = vector.load %arg6[%c0_87, %c0_88] : memref<128x16xf32, #tpu.memory_space<vmem>>, vector<128x16xf32>
    %cst_89 = arith.constant dense<0.000000e+00> : vector<1x16xf32>
    %221 = tpu.matmul %219, %220, %cst_89 {dimension_numbers = #tpu.dot_dimension_numbers<[1], [0], [0], [1], [0, 0, 1, 1], [], []>} : vector<1x128xf32>, vector<128x16xf32>, vector<1x16xf32> -> vector<1x16xf32>
    %222 = arith.addf %221, %3 : vector<1x16xf32>
    %223 = vector.extract_strided_slice %200 {offsets = [1, 0], sizes = [1, 16], strides = [1, 1]} : vector<4x16xf32> to vector<1x16xf32>
    %224 = arith.addf %222, %223 : vector<1x16xf32>
    %cst_90 = arith.constant 0.000000e+00 : f32
    %225 = vector.broadcast %cst_90 : f32 to vector<1x16xf32>
    %226 = arith.cmpf ogt, %224, %225 : vector<1x16xf32>
    %cst_91 = arith.constant 2.000000e-01 : f32
    %227 = vector.broadcast %cst_91 : f32 to vector<1x16xf32>
    %228 = arith.mulf %227, %224 : vector<1x16xf32>
    %229 = arith.select %226, %224, %228 : vector<1x16xi1>, vector<1x16xf32>
    %c0_92 = arith.constant 0 : index
    %c0_93 = arith.constant 0 : index
    %c16_94 = arith.constant 16 : index
    %230 = vector.load %arg8[%c0_92, %c0_93, %c16_94] : memref<1x1x64xf32, #tpu.memory_space<vmem>>, vector<1x1x16xf32>
    %231 = vector.shape_cast %230 : vector<1x1x16xf32> to vector<1x16xf32>
    %232 = vector.shape_cast %229 : vector<1x16xf32> to vector<1x1x16xf32>
    tpu.vector_store %arg8[%c0_92, %c0_93, %c16_94], %232 {strides = array<i32>} : memref<1x1x64xf32, #tpu.memory_space<vmem>>, vector<1x1x16xf32>,
    %233 = vector.extract_strided_slice %199 {offsets = [0, 64], sizes = [1, 32], strides = [1, 1]} : vector<1x128xf32> to vector<1x32xf32>
    %c0_95 = arith.constant 0 : index
    %c0_96 = arith.constant 0 : index
    %234 = vector.load %arg5[%c0_95, %c0_96] : memref<32x128xf32, #tpu.memory_space<vmem>>, vector<32x128xf32>
    %cst_97 = arith.constant dense<0.000000e+00> : vector<1x128xf32>
    %235 = tpu.matmul %233, %234, %cst_97 {dimension_numbers = #tpu.dot_dimension_numbers<[1], [0], [0], [1], [0, 0, 1, 1], [], []>} : vector<1x32xf32>, vector<32x128xf32>, vector<1x128xf32> -> vector<1x128xf32>
    %c0_98 = arith.constant 0 : index
    %c0_99 = arith.constant 0 : index
    %236 = vector.load %arg6[%c0_98, %c0_99] : memref<128x16xf32, #tpu.memory_space<vmem>>, vector<128x16xf32>
    %cst_100 = arith.constant dense<0.000000e+00> : vector<1x16xf32>
    %237 = tpu.matmul %235, %236, %cst_100 {dimension_numbers = #tpu.dot_dimension_numbers<[1], [0], [0], [1], [0, 0, 1, 1], [], []>} : vector<1x128xf32>, vector<128x16xf32>, vector<1x16xf32> -> vector<1x16xf32>
    %238 = arith.addf %237, %3 : vector<1x16xf32>
    %239 = vector.extract_strided_slice %200 {offsets = [2, 0], sizes = [1, 16], strides = [1, 1]} : vector<4x16xf32> to vector<1x16xf32>
    %240 = arith.addf %238, %239 : vector<1x16xf32>
    %cst_101 = arith.constant 0.000000e+00 : f32
    %241 = vector.broadcast %cst_101 : f32 to vector<1x16xf32>
    %242 = arith.cmpf ogt, %240, %241 : vector<1x16xf32>
    %cst_102 = arith.constant 2.000000e-01 : f32
    %243 = vector.broadcast %cst_102 : f32 to vector<1x16xf32>
    %244 = arith.mulf %243, %240 : vector<1x16xf32>
    %245 = arith.select %242, %240, %244 : vector<1x16xi1>, vector<1x16xf32>
    %c0_103 = arith.constant 0 : index
    %c0_104 = arith.constant 0 : index
    %c32 = arith.constant 32 : index
    %246 = vector.load %arg8[%c0_103, %c0_104, %c32] : memref<1x1x64xf32, #tpu.memory_space<vmem>>, vector<1x1x16xf32>
    %247 = vector.shape_cast %246 : vector<1x1x16xf32> to vector<1x16xf32>
    %248 = vector.shape_cast %245 : vector<1x16xf32> to vector<1x1x16xf32>
    tpu.vector_store %arg8[%c0_103, %c0_104, %c32], %248 {strides = array<i32>} : memref<1x1x64xf32, #tpu.memory_space<vmem>>, vector<1x1x16xf32>,
    %249 = vector.extract_strided_slice %199 {offsets = [0, 96], sizes = [1, 32], strides = [1, 1]} : vector<1x128xf32> to vector<1x32xf32>
    %c0_105 = arith.constant 0 : index
    %c0_106 = arith.constant 0 : index
    %250 = vector.load %arg5[%c0_105, %c0_106] : memref<32x128xf32, #tpu.memory_space<vmem>>, vector<32x128xf32>
    %cst_107 = arith.constant dense<0.000000e+00> : vector<1x128xf32>
    %251 = tpu.matmul %249, %250, %cst_107 {dimension_numbers = #tpu.dot_dimension_numbers<[1], [0], [0], [1], [0, 0, 1, 1], [], []>} : vector<1x32xf32>, vector<32x128xf32>, vector<1x128xf32> -> vector<1x128xf32>
    %c0_108 = arith.constant 0 : index
    %c0_109 = arith.constant 0 : index
    %252 = vector.load %arg6[%c0_108, %c0_109] : memref<128x16xf32, #tpu.memory_space<vmem>>, vector<128x16xf32>
    %cst_110 = arith.constant dense<0.000000e+00> : vector<1x16xf32>
    %253 = tpu.matmul %251, %252, %cst_110 {dimension_numbers = #tpu.dot_dimension_numbers<[1], [0], [0], [1], [0, 0, 1, 1], [], []>} : vector<1x128xf32>, vector<128x16xf32>, vector<1x16xf32> -> vector<1x16xf32>
    %254 = arith.addf %253, %3 : vector<1x16xf32>
    %255 = vector.extract_strided_slice %200 {offsets = [3, 0], sizes = [1, 16], strides = [1, 1]} : vector<4x16xf32> to vector<1x16xf32>
    %256 = arith.addf %254, %255 : vector<1x16xf32>
    %cst_111 = arith.constant 0.000000e+00 : f32
    %257 = vector.broadcast %cst_111 : f32 to vector<1x16xf32>
    %258 = arith.cmpf ogt, %256, %257 : vector<1x16xf32>
    %cst_112 = arith.constant 2.000000e-01 : f32
    %259 = vector.broadcast %cst_112 : f32 to vector<1x16xf32>
    %260 = arith.mulf %259, %256 : vector<1x16xf32>
    %261 = arith.select %258, %256, %260 : vector<1x16xi1>, vector<1x16xf32>
    %c0_113 = arith.constant 0 : index
    %c0_114 = arith.constant 0 : index
    %c48 = arith.constant 48 : index
    %262 = vector.load %arg8[%c0_113, %c0_114, %c48] : memref<1x1x64xf32, #tpu.memory_space<vmem>>, vector<1x1x16xf32>
    %263 = vector.shape_cast %262 : vector<1x1x16xf32> to vector<1x16xf32>
    %264 = vector.shape_cast %261 : vector<1x16xf32> to vector<1x1x16xf32>
    tpu.vector_store %arg8[%c0_113, %c0_114, %c48], %264 {strides = array<i32>} : memref<1x1x64xf32, #tpu.memory_space<vmem>>, vector<1x1x16xf32>,
    return
  }
  func.func @transform_0(%arg0: i32, %arg1: i32) -> (i32, i32, i32) {
    %c0_i32 = arith.constant 0 : i32
    %c0_i32_0 = arith.constant 0 : i32
    return %arg1, %arg0, %c0_i32 : i32, i32, i32
  }
  func.func @transform_1(%arg0: i32, %arg1: i32) -> (i32, i32) {
    %c0_i32 = arith.constant 0 : i32
    %c0_i32_0 = arith.constant 0 : i32
    %c0_i32_1 = arith.constant 0 : i32
    return %c0_i32, %c0_i32_0 : i32, i32
  }
  func.func @transform_2(%arg0: i32, %arg1: i32) -> (i32, i32, i32) {
    %c0_i32 = arith.constant 0 : i32
    %c0_i32_0 = arith.constant 0 : i32
    %c0_i32_1 = arith.constant 0 : i32
    return %c0_i32, %arg0, %c0_i32_0 : i32, i32, i32
  }
  func.func @transform_3(%arg0: i32, %arg1: i32) -> (i32, i32) {
    %c0_i32 = arith.constant 0 : i32
    %c0_i32_0 = arith.constant 0 : i32
    %c0_i32_1 = arith.constant 0 : i32
    return %c0_i32, %c0_i32_0 : i32, i32
  }
  func.func @transform_4(%arg0: i32, %arg1: i32) -> (i32, i32) {
    %c0_i32 = arith.constant 0 : i32
    %c0_i32_0 = arith.constant 0 : i32
    %c0_i32_1 = arith.constant 0 : i32
    return %c0_i32, %c0_i32_0 : i32, i32
  }
  func.func @transform_5(%arg0: i32, %arg1: i32) -> (i32, i32) {
    %c0_i32 = arith.constant 0 : i32
    %c0_i32_0 = arith.constant 0 : i32
    %c0_i32_1 = arith.constant 0 : i32
    return %c0_i32, %c0_i32_0 : i32, i32
  }
  func.func @transform_6(%arg0: i32, %arg1: i32) -> (i32, i32, i32) {
    %c0_i32 = arith.constant 0 : i32
    %c0_i32_0 = arith.constant 0 : i32
    return %arg1, %arg0, %c0_i32 : i32, i32, i32
  }
}

</mosaic_0001>

<bundles_post_ra>
// kernel: tpu_custom_call.1
= control target key start
LH: loop header
LB: loop body
LE: loop exit
PB: predicated region body
PF: predicated region fallthrough
CT: control target
= control target key end

     0   :  { %11 = vsyncpa [#allocation3], 0  ;;  %s2779_s0 = inlined_call_operand.vmem [shape: f32[2,1,32], index: 0, kind: input, shape index: {}]   ;;  %s2780_s1 = inlined_call_operand.vmem [shape: f32[32,16], index: 1, kind: input, shape index: {}]   ;;  %s2781_s2 = inlined_call_operand.vmem [shape: f32[32,1,128], index: 2, kind: input, shape index: {}]   ;;  %s2782_s3 = inlined_call_operand.vmem [shape: f32[32,128], index: 3, kind: input, shape index: {}]   ;;  %s2783_s4 = inlined_call_operand.vmem [shape: f32[128,16], index: 4, kind: input, shape index: {}]   ;;  %s2784_s5 = inlined_call_operand.vmem [shape: f32[4,16], index: 5, kind: input, shape index: {}]   ;;  %s2785_s6 = inlined_call_operand.hbm [shape: f32[2,1,64], index: 6, kind: output, shape index: {}]  }
   0x1   :  { %13 = vsyncpa [#allocation3 + $0x1], 0  ;;  %s2282_s21 = smov 0   ;;  %s2284_s22 = smov 0  }
   0x2   :  { %s2286_s23 = smov 0   ;;  %s2288_s24 = smov 0  }
   0x3   :  { %s2290_s25 = smov 0   ;;  %s2292_s26 = smov 0  }
   0x4 LB: > { %s1539_s27 = sadd.s32 4294967295, %s2204_s26   ;;  %s1540_s28 = sadd.s32 4294967294, %s2204_s26   ;;  %s2204_s26 = sphi %s2292_s26, %s19_s26   ;;  %s2200_s25 = sphi %s2290_s25, %s2792_s25   ;;  %s2196_s24 = sphi %s2288_s24, %s2791_s24   ;;  %s2192_s23 = sphi %s2286_s23, %s2790_s23   ;;  %s2188_s22 = sphi %s2284_s22, %s2789_s22   ;;  %s2184_s21 = sphi %s2282_s21, %s2788_s21  }
   0x5   : > { %s28_s29 = sadd.s32 1, %s2200_s25  ;;  %s178_s30 = sadd.s32 1, %s2192_s23 }
   0x6   : > { %p29_p0 = scmp.ge.s32.totalorder %s28_s29, 2  ;;  %p188_p1 = scmp.ne.s32.totalorder %s2192_s23, %s2188_s22 }
   0x7   : > { %p189_p2 = scmp.eq.s32.totalorder %s1539_s27, 1  ;;  %p194_p3 = scmp.ne.s32.totalorder %s2188_s22, %s2184_s21 }
   0x8   : > { %s2794_s29 = smov (%p29_p0, %s28_s29), 0  ;;  %p195_p5 = scmp.eq.s32.totalorder %s1540_s28, 1 }
   0x9   : > { %p2322_p4 = por %p189_p2, %p188_p1  ;;  %s173_s8 = ssub.s32 %s2200_s25, %s2794_s29 }
   0xa   : > { %p1544_p6 = scmp.ge.s32.totalorder %s2204_s26, 1  ;;  %p176_p7 = scmp.eq.s32.totalorder %s173_s8, 0 }
   0xb   : > { %p2329_p8 = por %p195_p5, %p194_p3  ;;  %p240_p9 = scmp.lt.s32.totalorder %s2204_s26, 3 }
   0xc   : > { %s2335_s10 = scalar_select %p176_p7, %s2192_s23, %s178_s30  }
   0xd   : > { %p241_p10 = pnand %p1544_p6, %p240_p9 }
   0xe   : > { %p273_p11 = scmp.lt.s32.totalorder (!%p241_p10), %s2196_s24, 1  ;;  %v2206_v0 = vmov (!%p241_p10), 2   ;;  %v2207_v1 = vmov (!%p241_p10), 0   ;;  %v2208_v3 = vmov (!%p241_p10), 3   ;;  %v2209_v4 = vmov (!%p241_p10), 1   ;;  %v747_v33 = vld [vmem:[%s2782_s3] sm:$0xff] (!%p241_p10) }
   0xf   : > { %244 = sbr.rel (%p241_p10) target bundleno = 1160 (0x488), region = 44  ;;  %2095 = vset.pattern.permute.xlu1 (!%p241_p10), %v2206_v0  ;;  %2093 = vset.pattern.permute.xlu0 (!%p241_p10), %v2207_v1  ;;  %v2210_v5 = vmov (!%p241_p10), 4   ;;  %v2211_v6 = vmov (!%p241_p10), 5   ;;  %v2212_v7 = vmov (!%p241_p10), 6   ;;  %v2213_v8 = vmov (!%p241_p10), 8   ;;  %v748_v34 = vld [vmem:[%s2782_s3 + $0x8] sm:$0xff] (!%p241_p10) }
  0x10   : > { %v2214_v9 = vmov (!%p241_p10), 7   ;;  %v2215_v10 = vmov (!%p241_p10), 11   ;;  %v2216_v11 = vmov (!%p241_p10), 9   ;;  %v2217_v12 = vmov (!%p241_p10), 14   ;;  %v749_v37 = vld [vmem:[%s2782_s3 + $0x10] sm:$0xff] (!%p241_p10)  ;;  %v750_v38 = vld [vmem:[%s2782_s3 + $0x18] sm:$0xff] (!%p241_p10) }
  0x11   : > { %v2218_v13 = vmov (!%p241_p10), 10   ;;  %v2219_v14 = vmov (!%p241_p10), 17   ;;  %v2220_v15 = vmov (!%p241_p10), 12   ;;  %v2221_v16 = vmov (!%p241_p10), 20   ;;  %v361_v47 = vld [vmem:[%s2781_s2] sm:$0x1] (!%p241_p10) }
  0x12   : > { %v2222_v17 = vmov (!%p241_p10), 13   ;;  %v2223_v18 = vmov (!%p241_p10), 23   ;;  %v2224_v19 = vmov (!%p241_p10), 15   ;;  %v2225_v20 = vmov (!%p241_p10), 26   ;;  %v1546_v49 = vld [vmem:[%s2781_s2 + $0x1] sm:$0x1] (!%p241_p10) }
  0x13   : > { %v2226_v21 = vmov (!%p241_p10), 16   ;;  %v2227_v22 = vmov (!%p241_p10), 29   ;;  %v2228_v23 = vmov (!%p241_p10), 18   ;;  %v2229_v24 = vmov (!%p241_p10), 31   ;;  %v1547_v54 = vld [vmem:[%s2781_s2 + $0x2] sm:$0x1] (!%p241_p10) }
  0x14   : > { %v2230_v25 = vmov (!%p241_p10), 19   ;;  %v2231_v26 = vmov (!%p241_p10), 21   ;;  %v2232_v27 = vmov (!%p241_p10), 22   ;;  %v2233_v28 = vmov (!%p241_p10), 24   ;;  %v1548_v57 = vld [vmem:[%s2781_s2 + $0x3] sm:$0x1] (!%p241_p10) }
  0x15   : > { %v2234_v29 = vmov (!%p241_p10), 25   ;;  %v2235_v30 = vmov (!%p241_p10), 27   ;;  %v2236_v31 = vmov (!%p241_p10), 28   ;;  %v2237_v32 = vmov (!%p241_p10), 30   ;;  %v1549_v60 = vld [vmem:[%s2781_s2 + $0x4] sm:$0x1] (!%p241_p10) }
  0x16   : > { %s274_s11 = scalar_select %p273_p11, %s2196_s24, 1  ;;  %v2382_v35 = vpack.c.bf16 %v748_v34, %v747_v33  ;;  %v2238_v36 = vmov 0.0|0.0   ;;  %v2394_v39 = vpack.c.bf16 %v750_v38, %v749_v37  ;;  %vm2239_vm0 = vmmov 0   ;;  %v1556_v34 = vld [vmem:[%s2781_s2 + $0xb] sm:$0x1] }
  0x17   : > { %1878 = vmatprep.subr.bf16.mxu1 %v2238_v36  ;;  %1872 = vmatprep.subr.bf16.mxu0 %v2238_v36  ;;  %v2240_v40 = vmov 0.0   ;;  %v366_v41 = vlaneseq  ;;  %vm287_vm1 = vcmask 261120   ;;  %s2241_s19 = smov 64   ;;  %s2242_s20 = smov 96   ;;  %vm914_vm4 = vcmask 122880  }
  0x18   : > { %s278_s14 = scalar_lea.vmem %s2779_s0, %s274_s11  ;;  %1880 = vmatpush3.bf16.msra.mxu1 %v2382_v35  ;;  %1696 = vmatprep.mubr.msk.f32.mxu1 %vm2239_vm0, %v2240_v40  ;;  %s2243_s11 = smov 32   ;;  %vm1095_vm7 = vcmask 254080   ;;  %vm1271_vm8 = vcmask 385280   ;;  %vm1447_vm10 = vcmask 516480  }
  0x19   : > { %v2342_v2 = vld [vmem:[%s278_s14] sm:$0x1]  ;;  %1881 = vmatprep.subr.bf16.mxu1 %v2238_v36  ;;  %1685 = vmatprep.mubr.msk.f32.mxu0 %vm2239_vm0, %v2240_v40  ;;  %v367_v42 = vshrl.u32 %v366_v41, 7  ;;  %s271_s27 = sand.u32 1, %s2188_s22   ;;  %s2244_s30 = smov 16  }
  0x1a   : > { %386 = vperm.xlu1 %2095, %v2342_v2   ;;  %363 = vperm.xlu0 %2093, %v2342_v2   ;;  %s2715_s28 = scalar_lea.vmem [#allocation2], %s271_s27  ;;  %s1581_s8 = sshll.u32 %s2196_s24, 4 }
  0x1b   : > { %v2402_v43 = vsub.s32 0, %v367_v42  ;;  %s1463_s12 = sshll.u32 %s2715_s28, 4  ;;  %s2729_s15 = scalar_lea.hbm %s2785_s6, %s1581_s8  ;;  %s2731_s12 = int_to_ptr.vmem [resolvable:$true] %s1463_s12 }
  0x1c   : > { %1883 = vmatpush3.bf16.msra.mxu1 %v2394_v39  ;;  %s1450_s16 = scalar_lea.sflag [#allocation3], %s271_s27  ;;  %s2126_s17 = scalar_lea.vmem %s2731_s12, 16 }
  0x1d   : > { %1908 = vmatprep.subr.bf16.mxu1 %v2238_v36  ;;  %p2127_p12 = scmp.ne.s32.totalorder %s2731_s12, %s2126_s17  ;;  %s2246_s24 = smov [#allocation2]  }
  0x1e   : > { %2096 = vset.pattern.permute.xlu1 %v2208_v3  ;;  %2094 = vset.pattern.permute.xlu0 %v2209_v4  ;;  %v1550_v4 = vld [vmem:[%s2781_s2 + $0x5] sm:$0x1]  ;;  %s2130_s18 = sshll.u32 %s2246_s24, 4  ;;  %s2131_s18 = int_to_ptr.vmem [resolvable:$false] %s2130_s18 }
  0x1f   : > { %398 = vperm.xlu1 %2096, %v2342_v2   ;;  %374 = vperm.xlu0 %2094, %v2342_v2   ;;  %p2128_p13 = pnand %p2127_p12, %p2322_p4  ;;  %p2133_p1 = scmp.lt.s32.totalorder %s2731_s12, %s2131_s18 }
  0x21   : > { %p2129_p0 = pneg %p2128_p13 }
  0x23   : > { %2097 = vset.pattern.permute.xlu1 %v2210_v5  ;;  %2098 = vset.pattern.permute.xlu0 %v2211_v6 }
  0x24   : > { %410 = vperm.xlu1 %2097, %v2342_v2   ;;  %422 = vperm.xlu0 %2098, %v2342_v2  }
  0x28   : > { %2099 = vset.pattern.permute.xlu1 %v2212_v7  ;;  %2101 = vset.pattern.permute.xlu0 %v2213_v8 }
  0x29   : > { %434 = vperm.xlu1 %2099, %v2342_v2   ;;  %458 = vperm.xlu0 %2101, %v2342_v2  }
  0x2d   : > { %2100 = vset.pattern.permute.xlu1 %v2214_v9  ;;  %2104 = vset.pattern.permute.xlu0 %v2215_v10  ;;  %v1551_v10 = vld [vmem:[%s2781_s2 + $0x6] sm:$0x1] }
  0x2e   : > { %446 = vperm.xlu1 %2100, %v2342_v2   ;;  %494 = vperm.xlu0 %2104, %v2342_v2  }
  0x32   : > { %2102 = vset.pattern.permute.xlu1 %v2216_v11  ;;  %2107 = vset.pattern.permute.xlu0 %v2217_v12 }
  0x33   : > { %470 = vperm.xlu1 %2102, %v2342_v2   ;;  %530 = vperm.xlu0 %2107, %v2342_v2  }
  0x37   : > { %2103 = vset.pattern.permute.xlu1 %v2218_v13  ;;  %2110 = vset.pattern.permute.xlu0 %v2219_v14 }
  0x38   : > { %482 = vperm.xlu1 %2103, %v2342_v2   ;;  %566 = vperm.xlu0 %2110, %v2342_v2  }
  0x3c   : > { %2105 = vset.pattern.permute.xlu1 %v2220_v15  ;;  %2113 = vset.pattern.permute.xlu0 %v2221_v16  ;;  %v1552_v15 = vld [vmem:[%s2781_s2 + $0x7] sm:$0x1] }
  0x3d   : > { %506 = vperm.xlu1 %2105, %v2342_v2   ;;  %602 = vperm.xlu0 %2113, %v2342_v2  }
  0x41   : > { %2106 = vset.pattern.permute.xlu1 %v2222_v17  ;;  %2116 = vset.pattern.permute.xlu0 %v2223_v18 }
  0x42   : > { %518 = vperm.xlu1 %2106, %v2342_v2   ;;  %638 = vperm.xlu0 %2116, %v2342_v2  }
  0x46   : > { %2108 = vset.pattern.permute.xlu1 %v2224_v19  ;;  %2119 = vset.pattern.permute.xlu0 %v2225_v20  ;;  %v1553_v19 = vld [vmem:[%s2781_s2 + $0x8] sm:$0x1] }
  0x47   : > { %542 = vperm.xlu1 %2108, %v2342_v2   ;;  %674 = vperm.xlu0 %2119, %v2342_v2  }
  0x4b   : > { %2109 = vset.pattern.permute.xlu1 %v2226_v21  ;;  %2122 = vset.pattern.permute.xlu0 %v2227_v22 }
  0x4c   : > { %554 = vperm.xlu1 %2109, %v2342_v2   ;;  %710 = vperm.xlu0 %2122, %v2342_v2  }
  0x50   : > { %2111 = vset.pattern.permute.xlu1 %v2228_v23  ;;  %2125 = vset.pattern.permute.xlu0 %v2229_v24 }
  0x51   : > { %578 = vperm.xlu1 %2111, %v2342_v2  }
  0x55   : > { %2112 = vset.pattern.permute.xlu1 %v2230_v25  ;;  %v1554_v25 = vld [vmem:[%s2781_s2 + $0x9] sm:$0x1] }
  0x56   : > { %590 = vperm.xlu1 %2112, %v2342_v2  }
  0x5a   : > { %2114 = vset.pattern.permute.xlu1 %v2231_v26 }
  0x5b   : > { %614 = vperm.xlu1 %2114, %v2342_v2  }
  0x5f   : > { %2115 = vset.pattern.permute.xlu1 %v2232_v27 }
  0x60   : > { %626 = vperm.xlu1 %2115, %v2342_v2  }
  0x64   : > { %2117 = vset.pattern.permute.xlu1 %v2233_v28 }
  0x65   : > { %650 = vperm.xlu1 %2117, %v2342_v2  }
  0x69   : > { %2118 = vset.pattern.permute.xlu1 %v2234_v29 }
  0x6a   : > { %662 = vperm.xlu1 %2118, %v2342_v2  }
  0x6e   : > { %2120 = vset.pattern.permute.xlu1 %v2235_v30  ;;  %v1555_v30 = vld [vmem:[%s2781_s2 + $0xa] sm:$0x1] }
  0x6f   : > { %686 = vperm.xlu1 %2120, %v2342_v2  }
  0x73   : > { %2121 = vset.pattern.permute.xlu1 %v2236_v31 }
  0x74   : > { %698 = vperm.xlu1 %2121, %v2342_v2  }
  0x78   : > { %2123 = vset.pattern.permute.xlu1 %v2237_v32 }
  0x79   : > { %722 = vperm.xlu1 %2123, %v2342_v2  }
  0x7d   : > { %2124 = vset.pattern.permute.xlu1 %v2229_v24 }
  0x7e   : > { %734 = vperm.xlu1 %2124, %v2342_v2  }
  0x99   : > { %v387_v44 = vpop.permute.xlu1 %386  ;;  %v364_v45 = vpop.permute.xlu0 %363 }
  0x9a   : > { %v369_v46 = vrot.slane %v364_v45, %v2402_v43  ;;  %v392_v51 = vrot.slane %v387_v44, %v2402_v43  ;;  %v1557_v45 = vld [vmem:[%s2781_s2 + $0xc] sm:$0x1] }
  0x9c   : > { %v370_v52 = vmul.f32 %v369_v46, %v361_v47  ;;  %v393_v58 = vmul.f32 %v1547_v54, %v392_v51  ;;  %v1559_v54 = vld [vmem:[%s2781_s2 + $0xe] sm:$0x1] }
  0x9e   : > { %v399_v48 = vpop.permute.xlu1 %398  ;;  %v375_v50 = vpop.permute.xlu0 %374 }
  0x9f   : > { %v380_v53 = vrot.slane %v375_v50, %v2402_v43  ;;  %v404_v55 = vrot.slane %v399_v48, %v2402_v43  ;;  %v1558_v50 = vld [vmem:[%s2781_s2 + $0xd] sm:$0x1] }
  0xa1   : > { %v381_v56 = vmul.f32 %v1546_v49, %v380_v53  ;;  %v405_v1 = vmul.f32 %v1548_v57, %v404_v55 }
  0xa3   : > { %v382_v59 = vadd.f32 %v381_v56, %v370_v52  ;;  %v411_v61 = vpop.permute.xlu1 %410  ;;  %v423_v62 = vpop.permute.xlu0 %422 }
  0xa4   : > { %v416_v63 = vrot.slane %v411_v61, %v2402_v43  ;;  %v428_v0 = vrot.slane %v423_v62, %v2402_v43 }
  0xa5   : > { %v394_v3 = vadd.f32 %v393_v58, %v382_v59 }
  0xa6   : > { %v417_v5 = vmul.f32 %v1549_v60, %v416_v63  ;;  %v429_v7 = vmul.f32 %v1550_v4, %v428_v0  ;;  %v1560_v60 = vld [vmem:[%s2781_s2 + $0xf] sm:$0x1] }
  0xa7   : > { %v406_v6 = vadd.f32 %v405_v1, %v394_v3  ;;  %v1561_v1 = vld [vmem:[%s2781_s2 + $0x10] sm:$0x1] }
  0xa8   : > { %v435_v8 = vpop.permute.xlu1 %434  ;;  %v459_v12 = vpop.permute.xlu0 %458 }
  0xa9   : > { %v418_v9 = vadd.f32 %v417_v5, %v406_v6  ;;  %v440_v11 = vrot.slane %v435_v8, %v2402_v43  ;;  %v464_v18 = vrot.slane %v459_v12, %v2402_v43  ;;  %v1562_v6 = vld [vmem:[%s2781_s2 + $0x11] sm:$0x1]  ;;  %v1563_v12 = vld [vmem:[%s2781_s2 + $0x12] sm:$0x1] }
  0xab   : > { %v430_v13 = vadd.f32 %v429_v7, %v418_v9  ;;  %v441_v14 = vmul.f32 %v1551_v10, %v440_v11  ;;  %v465_v23 = vmul.f32 %v1553_v19, %v464_v18 }
  0xad   : > { %v447_v16 = vpop.permute.xlu1 %446  ;;  %v442_v20 = vadd.f32 %v441_v14, %v430_v13  ;;  %v495_v27 = vpop.permute.xlu0 %494 }
  0xae   : > { %v452_v17 = vrot.slane %v447_v16, %v2402_v43  ;;  %v500_v33 = vrot.slane %v495_v27, %v2402_v43  ;;  %v1566_v27 = vld [vmem:[%s2781_s2 + $0x15] sm:$0x1] }
  0xb0   : > { %v453_v21 = vmul.f32 %v1552_v15, %v452_v17  ;;  %v501_v42 = vmul.f32 %v1556_v34, %v500_v33  ;;  %v1564_v17 = vld [vmem:[%s2781_s2 + $0x13] sm:$0x1] }
  0xb2   : > { %v454_v22 = vadd.f32 %v453_v21, %v442_v20  ;;  %v471_v24 = vpop.permute.xlu1 %470  ;;  %v531_v47 = vpop.permute.xlu0 %530  ;;  %v1565_v21 = vld [vmem:[%s2781_s2 + $0x14] sm:$0x1] }
  0xb3   : > { %v476_v26 = vrot.slane %v471_v24, %v2402_v43  ;;  %v536_v53 = vrot.slane %v531_v47, %v2402_v43  ;;  %v1569_v47 = vld [vmem:[%s2781_s2 + $0x18] sm:$0x1] }
  0xb4   : > { %v466_v28 = vadd.f32 %v465_v23, %v454_v22 }
  0xb5   : > { %v477_v29 = vmul.f32 %v1554_v25, %v476_v26  ;;  %v537_v58 = vmul.f32 %v1559_v54, %v536_v53 }
  0xb7   : > { %v483_v31 = vpop.permute.xlu1 %482  ;;  %v478_v37 = vadd.f32 %v477_v29, %v466_v28  ;;  %v567_v62 = vpop.permute.xlu0 %566 }
  0xb8   : > { %v488_v32 = vrot.slane %v483_v31, %v2402_v43  ;;  %v572_v5 = vrot.slane %v567_v62, %v2402_v43  ;;  %v1572_v62 = vld [vmem:[%s2781_s2 + $0x1b] sm:$0x1] }
  0xba   : > { %v489_v38 = vmul.f32 %v1555_v30, %v488_v32  ;;  %v573_v10 = vmul.f32 %v1562_v6, %v572_v5  ;;  %v1567_v32 = vld [vmem:[%s2781_s2 + $0x16] sm:$0x1] }
  0xbc   : > { %v490_v41 = vadd.f32 %v489_v38, %v478_v37  ;;  %v507_v44 = vpop.permute.xlu1 %506  ;;  %v603_v14 = vpop.permute.xlu0 %602  ;;  %v1568_v38 = vld [vmem:[%s2781_s2 + $0x17] sm:$0x1] }
  0xbd   : > { %v512_v46 = vrot.slane %v507_v44, %v2402_v43  ;;  %v608_v20 = vrot.slane %v603_v14, %v2402_v43  ;;  %v1575_v14 = vld [vmem:[%s2781_s2 + $0x1e] sm:$0x1] }
  0xbe   : > { %v502_v48 = vadd.f32 %v501_v42, %v490_v41 }
  0xbf   : > { %v513_v49 = vmul.f32 %v1557_v45, %v512_v46  ;;  %v609_v25 = vmul.f32 %v1565_v21, %v608_v20  ;;  %v283_v21 = vld [vmem:[%s2780_s1] sm:$0xff] }
  0xc1   : > { %v519_v51 = vpop.permute.xlu1 %518  ;;  %v514_v55 = vadd.f32 %v513_v49, %v502_v48  ;;  %v639_v29 = vpop.permute.xlu0 %638 }
  0xc2   : > { %v524_v52 = vrot.slane %v519_v51, %v2402_v43  ;;  %v644_v37 = vrot.slane %v639_v29, %v2402_v43 }
  0xc4   : > { %v525_v56 = vmul.f32 %v1558_v50, %v524_v52  ;;  %v645_v45 = vmul.f32 %v1568_v38, %v644_v37  ;;  %v1570_v52 = vld [vmem:[%s2781_s2 + $0x19] sm:$0x1]  ;;  %v826_v38 = vld [vmem:[%s2783_s4 + $0x10] sm:$0xff] }
  0xc6   : > { %v526_v57 = vadd.f32 %v525_v56, %v514_v55  ;;  %v543_v59 = vpop.permute.xlu1 %542  ;;  %v675_v49 = vpop.permute.xlu0 %674  ;;  %v1571_v56 = vld [vmem:[%s2781_s2 + $0x1a] sm:$0x1] }
  0xc7   : > { %v548_v61 = vrot.slane %v543_v59, %v2402_v43  ;;  %v680_v55 = vrot.slane %v675_v49, %v2402_v43  ;;  %v833_v49 = vld [vmem:[%s2783_s4 + $0x48] sm:$0xff] }
  0xc8   : > { %v538_v63 = vadd.f32 %v537_v58, %v526_v57 }
  0xc9   : > { %v549_v0 = vmul.f32 %v1560_v60, %v548_v61  ;;  %v681_v60 = vmul.f32 %v1571_v56, %v680_v55  ;;  %v837_v55 = vld [vmem:[%s2783_s4 + $0x68] sm:$0xff] }
  0xcb   : > { %v555_v3 = vpop.permute.xlu1 %554  ;;  %v550_v7 = vadd.f32 %v549_v0, %v538_v63  ;;  %v711_v0 = vpop.permute.xlu0 %710 }
  0xcc   : > { %v560_v4 = vrot.slane %v555_v3, %v2402_v43 }
  0xce   : > { %v561_v8 = vmul.f32 %v1561_v1, %v560_v4  ;;  %v1573_v4 = vld [vmem:[%s2781_s2 + $0x1c] sm:$0x1] }
  0xd0   : > { %v562_v9 = vadd.f32 %v561_v8, %v550_v7  ;;  %v579_v11 = vpop.permute.xlu1 %578  ;;  %v716_v7 = vrot.slane %v711_v0, %v2402_v43  ;;  %v1574_v8 = vld [vmem:[%s2781_s2 + $0x1d] sm:$0x1] }
  0xd1   : > { %v584_v13 = vrot.slane %v579_v11, %v2402_v43 }
  0xd2   : > { %v574_v15 = vadd.f32 %v573_v10, %v562_v9 }
  0xd3   : > { %v585_v16 = vmul.f32 %v1563_v12, %v584_v13  ;;  %v717_v12 = vmul.f32 %v1574_v8, %v716_v7 }
  0xd5   : > { %v591_v18 = vpop.permute.xlu1 %590  ;;  %v586_v22 = vadd.f32 %v585_v16, %v574_v15 }
  0xd6   : > { %v596_v19 = vrot.slane %v591_v18, %v2402_v43  ;;  %v1576_v18 = vld [vmem:[%s2781_s2 + $0x1f] sm:$0x1] }
  0xd8   : > { %v597_v23 = vmul.f32 %v1564_v17, %v596_v19 }
  0xda   : > { %v598_v24 = vadd.f32 %v597_v23, %v586_v22  ;;  %v615_v26 = vpop.permute.xlu1 %614  ;;  %v284_v22 = vld [vmem:[%s2780_s1 + $0x8] sm:$0xff]  ;;  %v285_v23 = vld [vmem:[%s2780_s1 + $0x10] sm:$0xff] }
  0xdb   : > { %v620_v28 = vrot.slane %v615_v26, %v2402_v43  ;;  %v1873_v26 = vpack.c.bf16 %v284_v22, %v283_v21 }
  0xdc   : > { %v610_v30 = vadd.f32 %v609_v25, %v598_v24 }
  0xdd   : > { %v621_v31 = vmul.f32 %v1566_v27, %v620_v28  ;;  %v286_v27 = vld [vmem:[%s2780_s1 + $0x18] sm:$0xff]  ;;  %1874 = vmatpush3.bf16.msra.mxu0 %v1873_v26 }
  0xde   : > { %v1876_v29 = vpack.c.bf16 %v286_v27, %v285_v23  ;;  %1875 = vmatprep.subr.bf16.mxu0 %v2238_v36 }
  0xdf   : > { %v627_v33 = vpop.permute.xlu1 %626  ;;  %v622_v41 = vadd.f32 %v621_v31, %v610_v30  ;;  %v824_v31 = vld [vmem:[%s2783_s4] sm:$0xff] }
  0xe0   : > { %v632_v34 = vrot.slane %v627_v33, %v2402_v43 }
  0xe1   : > { %1877 = vmatpush3.bf16.msra.mxu0 %v1876_v29 }
  0xe2   : > { %v633_v42 = vmul.f32 %v1567_v32, %v632_v34  ;;  %v825_v32 = vld [vmem:[%s2783_s4 + $0x8] sm:$0xff]  ;;  %1884 = vmatprep.subr.bf16.mxu0 %v2238_v36 }
  0xe3   : > { %v2554_v37 = vpack.c.bf16 %v825_v32, %v824_v31 }
  0xe4   : > { %v634_v44 = vadd.f32 %v633_v42, %v622_v41  ;;  %v651_v46 = vpop.permute.xlu1 %650  ;;  %v827_v41 = vld [vmem:[%s2783_s4 + $0x18] sm:$0xff]  ;;  %1686 = vmatmul.mubr.msk.f32.vlgmr.msra.gmra.mrb[0].mxu0 %vm287_vm1, %v2342_v2  ;;  %v828_v42 = vld [vmem:[%s2783_s4 + $0x20] sm:$0xff] }
  0xe5   : > { %v656_v48 = vrot.slane %v651_v46, %v2402_v43  ;;  %1886 = vmatpush3.bf16.msra.mxu0 %v2554_v37  ;;  %1731 = vmatprep.mubr.msk.f32.mxu0 %vm2239_vm0, %v2240_v40  ;;  %v831_v46 = vld [vmem:[%s2783_s4 + $0x38] sm:$0xff] }
  0xe6   : > { %v646_v50 = vadd.f32 %v645_v45, %v634_v44  ;;  %1887 = vmatprep.subr.bf16.mxu0 %v2238_v36  ;;  %v829_v44 = vld [vmem:[%s2783_s4 + $0x28] sm:$0xff]  ;;  %v830_v45 = vld [vmem:[%s2783_s4 + $0x30] sm:$0xff] }
  0xe7   : > { %v657_v51 = vmul.f32 %v1569_v47, %v656_v48  ;;  %v2584_v2 = vpack.c.bf16 %v829_v44, %v828_v42  ;;  %v2594_v47 = vpack.c.bf16 %v831_v46, %v830_v45  ;;  %v832_v48 = vld [vmem:[%s2783_s4 + $0x40] sm:$0xff] }
  0xe9   : > { %v663_v53 = vpop.permute.xlu1 %662  ;;  %v658_v57 = vadd.f32 %v657_v51, %v646_v50  ;;  %v2604_v50 = vpack.c.bf16 %v833_v49, %v832_v48  ;;  %v834_v51 = vld [vmem:[%s2783_s4 + $0x50] sm:$0xff] }
  0xea   : > { %v668_v54 = vrot.slane %v663_v53, %v2402_v43 }
  0xec   : > { %v669_v58 = vmul.f32 %v1570_v52, %v668_v54  ;;  %v835_v52 = vld [vmem:[%s2783_s4 + $0x58] sm:$0xff]  ;;  %v836_v54 = vld [vmem:[%s2783_s4 + $0x60] sm:$0xff] }
  0xed   : > { %v2614_v53 = vpack.c.bf16 %v835_v52, %v834_v51  ;;  %v2624_v56 = vpack.c.bf16 %v837_v55, %v836_v54 }
  0xee   : > { %v670_v59 = vadd.f32 %v669_v58, %v658_v57  ;;  %v687_v61 = vpop.permute.xlu1 %686  ;;  %v838_v57 = vld [vmem:[%s2783_s4 + $0x70] sm:$0xff]  ;;  %v839_v58 = vld [vmem:[%s2783_s4 + $0x78] sm:$0xff] }
  0xef   : > { %v692_v63 = vrot.slane %v687_v61, %v2402_v43 }
  0xf0   : > { %v682_v1 = vadd.f32 %v681_v60, %v670_v59  ;;  %v2634_v59 = vpack.c.bf16 %v839_v58, %v838_v57 }
  0xf1   : > { %v693_v3 = vmul.f32 %v1572_v62, %v692_v63 }
  0xf3   : > { %v699_v5 = vpop.permute.xlu1 %698  ;;  %v694_v9 = vadd.f32 %v693_v3, %v682_v1 }
  0xf4   : > { %v704_v6 = vrot.slane %v699_v5, %v2402_v43 }
  0xf6   : > { %v705_v10 = vmul.f32 %v1573_v4, %v704_v6 }
  0xf8   : > { %v706_v11 = vadd.f32 %v705_v10, %v694_v9  ;;  %v723_v13 = vpop.permute.xlu1 %722 }
  0xf9   : > { %v728_v15 = vrot.slane %v723_v13, %v2402_v43 }
  0xfa   : > { %v718_v16 = vadd.f32 %v717_v12, %v706_v11 }
  0xfb   : > { %v729_v17 = vmul.f32 %v1575_v14, %v728_v15 }
  0xfd   : > { %v735_v19 = vpop.permute.xlu1 %734  ;;  %v730_v24 = vadd.f32 %v729_v17, %v718_v16 }
  0xfe   : > { %v740_v20 = vrot.slane %v735_v19, %v2402_v43 }
 0x100   : > { %v741_v25 = vmul.f32 %v1576_v18, %v740_v20 }
 0x102   : > { %v742_v28 = vadd.f32 %v741_v25, %v730_v24 }
 0x104   : > { %vm743_vm2 = vcmp.gt.f32.partialorder %v742_v28, 0.0  ;;  %v744_v30 = vmul.f32 0.2, %v742_v28 }
 0x106   : > { %v745_v33 = vsel %vm743_vm2, %v742_v28, %v744_v30 }
 0x107   : > { %1697 = vmatmul.mubr.msk.f32.vlgmr.msra.gmra.mrb[0].mxu1 %vm287_vm1, %v745_v33  ;;  %v923_v34 = vrot.slane %v745_v33, %v2402_v43  ;;  %v2569_v43 = vpack.c.bf16 %v827_v41, %v826_v38 }
 0x108   : > { %1910 = vmatpush3.bf16.msra.mxu1 %v2382_v35  ;;  %1742 = vmatprep.mubr.msk.f32.mxu1 %vm2239_vm0, %v2240_v40 }
 0x109   : > { %1101 = vrot.lane.b32.xlu1 %v923_v34, %s2241_s19  ;;  %924 = vrot.lane.b32.xlu0 %v923_v34, %s2242_s20  ;;  %s2132_s19 = scalar_lea.vmem %s2131_s18, 32 }
 0x10a   : > { %1911 = vmatprep.subr.bf16.mxu1 %v2238_v36  ;;  %1889 = vmatpush3.bf16.msra.mxu0 %v2569_v43  ;;  %p2134_p2 = scmp.lt.s32.totalorder %s2132_s19, %s2126_s17 }
 0x10b   : > { %1890 = vmatprep.subr.bf16.mxu0 %v2238_v36 }
 0x10c   : > { %1913 = vmatpush3.bf16.msra.mxu1 %v2394_v39  ;;  %p2135_p3 = por %p2134_p2, %p2133_p1 }
 0x10d   : > { %1277 = vrot.lane.b32.xlu0 %v923_v34, %s2243_s11  ;;  %1914 = vmatprep.subr.bf16.mxu1 %v2238_v36 }
 0x10e   : > { %1892 = vmatpush3.bf16.msra.mxu0 %v2584_v2  ;;  %p2136_p5 = pnand %p2135_p3, %p2129_p0 }
 0x10f   : > { %1893 = vmatprep.subr.bf16.mxu0 %v2238_v36 }
 0x112   : > { %1895 = vmatpush3.bf16.msra.mxu0 %v2594_v47 }
 0x113   : > { %1896 = vmatprep.subr.bf16.mxu0 %v2238_v36 }
 0x116   : > { %1898 = vmatpush3.bf16.msra.mxu0 %v2604_v50 }
 0x117   : > { %1899 = vmatprep.subr.bf16.mxu0 %v2238_v36 }
 0x11a   : > { %1901 = vmatpush3.bf16.msra.mxu0 %v2614_v53 }
 0x11b   : > { %1902 = vmatprep.subr.bf16.mxu0 %v2238_v36 }
 0x11e   : > { %1904 = vmatpush3.bf16.msra.mxu0 %v2624_v56 }
 0x11f   : > { %1905 = vmatprep.subr.bf16.mxu0 %v2238_v36 }
 0x122   : > { %1907 = vmatpush3.bf16.msra.mxu0 %v2634_v59 }
 0x123   : > { %1938 = vmatprep.subr.bf16.mxu0 %v2238_v36 }
 0x17b   : > { %v925_v60 = vpop.permute.xlu0 %924  ;;  %v1102_v1 = vpop.permute.xlu1 %1101 }
 0x17c   : > { %1743 = vmatmul.mubr.msk.f32.vlgmr.msra.gmra.mrb[2].mxu1 %vm287_vm1, %v925_v60 }
 0x17d   : > { %1916 = vmatpush3.bf16.msra.mxu1 %v2554_v37  ;;  %1777 = vmatprep.mubr.msk.f32.mxu1 %vm2239_vm0, %v2240_v40 }
 0x17e   : > { %1917 = vmatprep.subr.bf16.mxu1 %v2238_v36 }
 0x17f   : > { %v1278_v5 = vpop.permute.xlu0 %1277 }
 0x181   : > { %1919 = vmatpush3.bf16.msra.mxu1 %v2569_v43 }
 0x182   : > { %1920 = vmatprep.subr.bf16.mxu1 %v2238_v36 }
 0x185   : > { %1922 = vmatpush3.bf16.msra.mxu1 %v2584_v2 }
 0x186   : > { %1923 = vmatprep.subr.bf16.mxu1 %v2238_v36 }
 0x189   : > { %1925 = vmatpush3.bf16.msra.mxu1 %v2594_v47 }
 0x18a   : > { %1926 = vmatprep.subr.bf16.mxu1 %v2238_v36 }
 0x18d   : > { %1928 = vmatpush3.bf16.msra.mxu1 %v2604_v50 }
 0x18e   : > { %1929 = vmatprep.subr.bf16.mxu1 %v2238_v36 }
 0x191   : > { %1931 = vmatpush3.bf16.msra.mxu1 %v2614_v53 }
 0x192   : > { %1932 = vmatprep.subr.bf16.mxu1 %v2238_v36 }
 0x195   : > { %1934 = vmatpush3.bf16.msra.mxu1 %v2624_v56 }
 0x196   : > { %1935 = vmatprep.subr.bf16.mxu1 %v2238_v36 }
 0x199   : > { %1937 = vmatpush3.bf16.msra.mxu1 %v2634_v59 }
 0x19a   : > { %1968 = vmatprep.subr.bf16.mxu1 %v2238_v36 }
 0x1b7   : > { %v2662_v63 = vpop.f32.mrb[0].mxu0 }
 0x1b8   : > { %v1687_v0 = vpop.f32.mrb[1].mxu0 }
 0x1da   : > { %v820_v61 = vpop.f32.mrb[0].mxu1 }
 0x1db   : > { %v1698_v62 = vpop.f32.mrb[1].mxu1  ;;  %1732 = vmatmul.mubr.f32.vlgmr.msra.gmra.mrb[2].mxu0 %v820_v61 }
 0x1dc   : > { %1940 = vmatpush3.bf16.msra.mxu0 %v2382_v35  ;;  %1788 = vmatprep.mubr.msk.f32.mxu0 %vm2239_vm0, %v2240_v40 }
 0x1dd   : > { %1941 = vmatprep.subr.bf16.mxu0 %v2238_v36 }
 0x1e0   : > { %1943 = vmatpush3.bf16.msra.mxu0 %v2394_v39 }
 0x1e1   : > { %1944 = vmatprep.subr.bf16.mxu0 %v2238_v36 }
 0x1e3   : > { %1789 = vmatmul.mubr.msk.f32.vlgmr.msra.gmra.mrb[4].mxu0 %vm287_vm1, %v1102_v1 }
 0x1e4   : > { %1946 = vmatpush3.bf16.msra.mxu0 %v2554_v37  ;;  %1823 = vmatprep.mubr.msk.f32.mxu0 %vm2239_vm0, %v2240_v40 }
 0x1e5   : > { %1947 = vmatprep.subr.bf16.mxu0 %v2238_v36 }
 0x1e8   : > { %1949 = vmatpush3.bf16.msra.mxu0 %v2569_v43 }
 0x1e9   : > { %1950 = vmatprep.subr.bf16.mxu0 %v2238_v36 }
 0x1ec   : > { %1952 = vmatpush3.bf16.msra.mxu0 %v2584_v2 }
 0x1ed   : > { %1953 = vmatprep.subr.bf16.mxu0 %v2238_v36 }
 0x1f0   : > { %1955 = vmatpush3.bf16.msra.mxu0 %v2594_v47 }
 0x1f1   : > { %1956 = vmatprep.subr.bf16.mxu0 %v2238_v36 }
 0x1f4   : > { %1958 = vmatpush3.bf16.msra.mxu0 %v2604_v50 }
 0x1f5   : > { %1959 = vmatprep.subr.bf16.mxu0 %v2238_v36 }
 0x1f8   : > { %1961 = vmatpush3.bf16.msra.mxu0 %v2614_v53 }
 0x1f9   : > { %1962 = vmatprep.subr.bf16.mxu0 %v2238_v36 }
 0x1fc   : > { %1964 = vmatpush3.bf16.msra.mxu0 %v2624_v56 }
 0x1fd   : > { %1965 = vmatprep.subr.bf16.mxu0 %v2238_v36 }
 0x200   : > { %1967 = vmatpush3.bf16.msra.mxu0 %v2634_v59 }
 0x24f   : > { %v994_v3 = vpop.f32.mrb[2].mxu1 }
 0x250   : > { %v1744_v4 = vpop.f32.mrb[3].mxu1  ;;  %1778 = vmatmul.mubr.f32.vlgmr.msra.gmra.mrb[4].mxu1 %v994_v3 }
 0x251   : > { %1970 = vmatpush3.bf16.msra.mxu1 %v2382_v35  ;;  %1834 = vmatprep.mubr.msk.f32.mxu1 %vm2239_vm0, %v2240_v40  ;;  %v746_v35 = vld [vmem:[%s2784_s5] sm:$0xf] }
 0x252   : > { %1971 = vmatprep.subr.bf16.mxu1 %v2238_v36  ;;  %v1085_v11 = vrot.slane %v746_v35, 1  ;;  %v1261_v20 = vrot.slane %v746_v35, 2  ;;  %v1437_v28 = vrot.slane %v746_v35, 3 }
 0x255   : > { %1973 = vmatpush3.bf16.msra.mxu1 %v2394_v39 }
 0x256   : > { %1974 = vmatprep.subr.bf16.mxu1 %v2238_v36 }
 0x258   : > { %1835 = vmatmul.mubr.msk.f32.vlgmr.msra.gmra.mrb[6].mxu1 %vm287_vm1, %v1278_v5 }
 0x259   : > { %1976 = vmatpush3.bf16.msra.mxu1 %v2554_v37  ;;  %1869 = vmatprep.mubr.msk.f32.mxu1 %vm2239_vm0, %v2240_v40 }
 0x25a   : > { %1977 = vmatprep.subr.bf16.mxu1 %v2238_v36 }
 0x25d   : > { %1979 = vmatpush3.bf16.msra.mxu1 %v2569_v43 }
 0x25e   : > { %1980 = vmatprep.subr.bf16.mxu1 %v2238_v36 }
 0x261   : > { %1982 = vmatpush3.bf16.msra.mxu1 %v2584_v2 }
 0x262   : > { %1983 = vmatprep.subr.bf16.mxu1 %v2238_v36 }
 0x265   : > { %1985 = vmatpush3.bf16.msra.mxu1 %v2594_v47 }
 0x266   : > { %1986 = vmatprep.subr.bf16.mxu1 %v2238_v36 }
 0x269   : > { %1988 = vmatpush3.bf16.msra.mxu1 %v2604_v50 }
 0x26a   : > { %1989 = vmatprep.subr.bf16.mxu1 %v2238_v36 }
 0x26d   : > { %1991 = vmatpush3.bf16.msra.mxu1 %v2614_v53 }
 0x26e   : > { %1992 = vmatprep.subr.bf16.mxu1 %v2238_v36 }
 0x271   : > { %1994 = vmatpush3.bf16.msra.mxu1 %v2624_v56 }
 0x272   : > { %1995 = vmatprep.subr.bf16.mxu1 %v2238_v36 }
 0x275   : > { %1997 = vmatpush3.bf16.msra.mxu1 %v2634_v59 }
 0x2ae   : > { %v906_v39 = vpop.f32.mrb[2].mxu0 }
 0x2af   : > { %v907_v40 = vadd.f32 %v906_v39, %v2662_v63  ;;  %v1733_v6 = vpop.f32.mrb[3].mxu0 }
 0x2b1   : > { %v910_v7 = vadd.f32 %v907_v40, %v746_v35 }
 0x2b3   : > { %vm911_vm3 = vcmp.gt.f32.partialorder %v910_v7, 0.0  ;;  %v912_v8 = vmul.f32 0.2, %v910_v7 }
 0x2b5   : > { %v913_v9 = vsel %vm911_vm3, %v910_v7, %v912_v8 }
 0x2b6   : > { %v1171_v10 = vpop.f32.mrb[4].mxu0  ;;  %915 = vst.msk [vmem:[%s2715_s28] sm:$0x1] %vm914_vm4, %v913_v9 }
 0x2b7   : > { %v1790_v36 = vpop.f32.mrb[5].mxu0  ;;  %1824 = vmatmul.mubr.f32.vlgmr.msra.gmra.mrb[6].mxu0 %v1171_v10 }
 0x323   : > { %v1080_v12 = vpop.f32.mrb[4].mxu1 }
 0x324   : > { %v1081_v13 = vadd.f32 %v1080_v12, %v2662_v63  ;;  %v1779_v14 = vpop.f32.mrb[5].mxu1 }
 0x326   : > { %v1087_v15 = vadd.f32 %v1085_v11, %v1081_v13 }
 0x328   : > { %vm1088_vm5 = vcmp.gt.f32.partialorder %v1087_v15, 0.0  ;;  %v1089_v16 = vmul.f32 0.2, %v1087_v15 }
 0x32a   : > { %v1090_v17 = vsel %vm1088_vm5, %v1087_v15, %v1089_v16 }
 0x32b   : > { %v1347_v18 = vpop.f32.mrb[6].mxu1  ;;  %1092 = vrot.lane.b32.xlu1 %v1090_v17, %s2244_s30 }
 0x32c   : > { %v1836_v19 = vpop.f32.mrb[7].mxu1  ;;  %1870 = vmatmul.mubr.f32.vlgmr.msra.gmra.mrb[8].mxu1 %v1347_v18 }
 0x38a   : > { %v1257_v21 = vpop.f32.mrb[6].mxu0 }
 0x38b   : > { %v1258_v22 = vadd.f32 %v1257_v21, %v2662_v63  ;;  %v1825_v23 = vpop.f32.mrb[7].mxu0 }
 0x38d   : > { %v1263_v24 = vadd.f32 %v1261_v20, %v1258_v22 }
 0x38f   : > { %vm1264_vm6 = vcmp.gt.f32.partialorder %v1263_v24, 0.0  ;;  %v1265_v25 = vmul.f32 0.2, %v1263_v24 }
 0x391   : > { %v1266_v26 = vsel %vm1264_vm6, %v1263_v24, %v1265_v25 }
 0x392   : > { %1268 = vrot.lane.b32.xlu0 %v1266_v26, %s2243_s11  ;;  %s2245_s11 = smov 48  }
 0x39d   : > { %v1093_v27 = vpop.permute.xlu1 %1092 }
 0x39e   : > { %1096 = vst.msk [vmem:[%s2715_s28] sm:$0x1] %vm1095_vm7, %v1093_v27 }
 0x3ff   : > { %v1433_v29 = vpop.f32.mrb[8].mxu1 }
 0x400   : > { %v1434_v30 = vadd.f32 %v1433_v29, %v2662_v63  ;;  %v1871_v31 = vpop.f32.mrb[9].mxu1 }
 0x402   : > { %v1439_v32 = vadd.f32 %v1437_v28, %v1434_v30 }
 0x404   : > { %v1269_v33 = vpop.permute.xlu0 %1268  ;;  %vm1440_vm9 = vcmp.gt.f32.partialorder %v1439_v32, 0.0  ;;  %v1441_v34 = vmul.f32 0.2, %v1439_v32 }
 0x405   : > { %1272 = vst.msk [vmem:[%s2715_s28] sm:$0x1] %vm1271_vm8, %v1269_v33 }
 0x406   : > { %v1442_v37 = vsel %vm1440_vm9, %v1439_v32, %v1441_v34 }
 0x407   : > { %1444 = vrot.lane.b32.xlu1 %v1442_v37, %s2245_s11 }
 0x479   : > { %v1445_v38 = vpop.permute.xlu1 %1444 }
 0x47a   : > { %1448 = vst.msk [vmem:[%s2715_s28] sm:$0x1] %vm1447_vm10, %v1445_v38 }
 0x47b   : > { %2139 = shalt.err (!%p2136_p5)
}
 0x47c   : > { %s2140_s20 = scalar_lea.hbm %s2729_s15, 16  ;;  %s2144_s30 = scalar_lea.hbm %s2785_s6, 32 }
 0x47d   : > { %p2141_p6 = scmp.ne.s32.totalorder %s2729_s15, %s2140_s20  ;;  %p2145_p10 = scmp.lt.u32.totalorder %s2729_s15, %s2785_s6 }
 0x47e   : > { %p2146_p11 = scmp.lt.u32.totalorder %s2144_s30, %s2140_s20  ;;  %p2148_p13 = scmp.lt.u32.totalorder %s2140_s20, %s2729_s15 }
 0x47f   : > { %p2142_p7 = pnand %p2141_p6, %p2322_p4 }
 0x480   : > { %p2147_p12 = por %p2146_p11, %p2145_p10 }
 0x481   : > { %p2143_p9 = pneg %p2142_p7 }
 0x482   : > { %p2149_p0 = por %p2148_p13, %p2147_p12 }
 0x484   : > { %p2150_p1 = pnand %p2149_p0, %p2143_p9 }
 0x486   : > { %2153 = shalt.err (!%p2150_p1)
}
 0x487   : > { %1998 = dma.vmem_to_hbm [thread:$0]  (%p2322_p4), %s2731_s12, 16, %s2729_s15, %s1450_s16  }
 0x488 PF: > { %p2004_p2 = scmp.ge.s32.totalorder %s2204_s26, 2  ;;  %s1475_s13 = sand.u32 1, %s2184_s21  }
 0x489   : > { %s1476_s14 = scalar_lea.sflag [#allocation3], %s1475_s13 }
 0x48a   : > { %p2001_p3 = pnand %p2004_p2, %p2329_p8 }
 0x48c   : > { %2179 = dma.done.wait (!%p2001_p3), %s1476_s14, 16  }
 0x48d   : > { %2181 = vsyncadd (!%p2001_p3), %s1476_s14, 4294967280  ;;  %s19_s26 = sadd.s32 1, %s2204_s26   ;;  %s2788_s21 = smov %s2188_s22 }
 0x48e   : > { %p16_p5 = scmp.ge.s32.totalorder %s19_s26, 4   ;;  %s2789_s22 = smov %s2192_s23 }
 0x48f   : > { %s2790_s23 = smov %s2335_s10  ;;  %s2791_s24 = smov %s2200_s25 }
 0x490   : > { %s2792_s25 = smov %s2794_s29  ;;  %18 = sbr.rel (!%p16_p5) target bundleno = 4 (0x4), region = 113 }
 0x497   :  { %1480 = vsyncpa [#allocation3], 1 }
 0x498   :  { %1482 = vsyncpa [#allocation3 + $0x1], 1 }

</bundles_post_ra>
